<compile_context>
chip_gen: v5e
topology: v5e:2x2
jax: 0.10.0
libtpu: 0.0.40
codegen_flags: <defaults>
</compile_context>

<pallas_src>
import numpy as np
import jax
import jax.numpy as jnp
from jax.experimental import pallas as pl
from jax.experimental.pallas import tpu as pltpu


def _round_up(x, m):
    return ((x + m - 1) // m) * m


_VMEM_LIMIT = 48 * 1024 * 1024   # sized to fit v7x's 64 MiB/TC with headroom


# -------------------- fused per-branch kernel (ECC branch) -------------------

def ecc_branch(x_nchw, bp, scale):
    """EfficientConvCompressH branch, fully fused: returns (B, Cout, W*scale)."""
    B, Cin, H, W = (int(d) for d in x_nchw.shape)
    Cout = int(bp['w1'].shape[0])
    Wp = W + 2                      # padded input width
    Wup = W * scale                 # upsampled width
    Wup_p = Wup + 2                 # padded upsampled width
    Hf1 = H * Wp                    # conv1 output columns (flattened, incl. 2 garbage/row)
    Hf2 = H * Wup_p                 # conv2 output columns
    Np1 = _round_up((H + 2) * Wp + 2, 128)     # flattened padded input length (lane-dense)
    N2 = _round_up((H + 2) * Wup_p + 2, 128)   # flattened conv2 input length (lane-dense)

    # ---- wrapper-side prep (cheap, no 9x amplification, no width repeat) ----
    xpad = jnp.pad(x_nchw, ((0, 0), (0, 0), (1, 1), (1, 1)))      # (B, Cin, H+2, W+2)
    xflat = xpad.reshape(B, Cin, (H + 2) * Wp)
    xflat = jnp.pad(xflat, ((0, 0), (0, 0), (0, Np1 - (H + 2) * Wp)))

    # fold BN scale into the conv weights; tap-major (9, Cout, Cin) layout.
    w1 = bp['w1'] * bp['s1'][:, None, None, None]
    w1 = jnp.transpose(w1, (2, 3, 0, 1)).reshape(9, Cout, Cin)
    w2 = bp['w2'] * bp['s2'][:, None, None, None]
    w2 = jnp.transpose(w2, (2, 3, 0, 1)).reshape(9, Cout, Cout)
    b1 = bp['b1'].reshape(Cout, 1)
    b2 = bp['b2'].reshape(Cout, 1)
    wdw = bp['wdw']                                               # (Cout, H)

    # Constant 0/1 matrix: conv1 output (flattened) -> zero-padded, nearest
    # width-upsampled conv2 input (flattened).  One MXU matmul does
    # PanoUpsampleW + re-pad and drops conv1's garbage columns.
    sel_np = np.zeros((Hf1, N2), np.float32)
    for hp in range(1, H + 1):
        for wp in range(1, Wup + 1):
            src = (hp - 1) * Wp + (wp - 1) // scale
            sel_np[src, hp * Wup_p + wp] = 1.0
    sel = jnp.asarray(sel_np)

    def kernel(x_ref, w1_ref, b1_ref, s_ref, w2_ref, b2_ref, wdw_ref, o_ref,
               y2in_sc, y2_sc):
        # ---- conv1 (3x3, pad 1) as 9 shifted MXU matmuls, BN scale folded ----
        acc1 = jnp.zeros((Cout, Hf1), jnp.float32)
        for kh in range(3):
            for kw in range(3):
                t = kh * 3 + kw
                off = kh * Wp + kw
                xs = x_ref[:, off:off + Hf1]                       # (Cin, Hf1)
                acc1 = acc1 + jnp.dot(w1_ref[t], xs,
                                      preferred_element_type=jnp.float32)
        y1 = jnp.maximum(acc1 + b1_ref[...], 0.0)                  # (Cout, Hf1)

        # ---- nearest width upsample + zero re-pad via selection matmul ----
        y2in_sc[...] = jnp.dot(y1, s_ref[...],
                               preferred_element_type=jnp.float32)  # (Cout, N2)

        # ---- conv2 (3x3, pad 1) ----
        acc2 = jnp.zeros((Cout, Hf2), jnp.float32)
        for kh in range(3):
            for kw in range(3):
                t = kh * 3 + kw
                off = kh * Wup_p + kw
                ys = y2in_sc[:, off:off + Hf2]                     # (Cout, Hf2)
                acc2 = acc2 + jnp.dot(w2_ref[t], ys,
                                      preferred_element_type=jnp.float32)
        y2_sc[...] = jnp.maximum(acc2 + b2_ref[...], 0.0)          # (Cout, Hf2)

        # ---- depthwise (H,1) height reduction ----
        out = jnp.zeros((Cout, Wup), jnp.float32)
        for h in range(H):
            base = h * Wup_p
            out = out + wdw_ref[:, h:h + 1] * y2_sc[:, base:base + Wup]
        o_ref[...] = out

    return pl.pallas_call(
        kernel,
        out_shape=jax.ShapeDtypeStruct((B, Cout, Wup), jnp.float32),
        grid=(B,),
        in_specs=[
            pl.BlockSpec((None, Cin, Np1), lambda b: (b, 0, 0)),
            pl.BlockSpec((9, Cout, Cin), lambda b: (0, 0, 0)),
            pl.BlockSpec((Cout, 1), lambda b: (0, 0)),
            pl.BlockSpec((Hf1, N2), lambda b: (0, 0)),
            pl.BlockSpec((9, Cout, Cout), lambda b: (0, 0, 0)),
            pl.BlockSpec((Cout, 1), lambda b: (0, 0)),
            pl.BlockSpec((Cout, H), lambda b: (0, 0)),
        ],
        out_specs=pl.BlockSpec((None, Cout, Wup), lambda b: (b, 0, 0)),
        scratch_shapes=[
            pltpu.VMEM((Cout, N2), jnp.float32),   # upsampled+padded conv2 input
            pltpu.VMEM((Cout, Hf2), jnp.float32),  # conv2 output (pre-reduction)
        ],
        compiler_params=pltpu.CompilerParams(
            dimension_semantics=("parallel",),
            vmem_limit_bytes=_VMEM_LIMIT),
    )(xflat, w1, b1, sel, w2, b2, wdw)


# ---------------------- fuse 1x1 conv + BN + ReLU kernel ---------------------

def _fuse_kernel(wf_ref, bf_ref, feat_ref, o_ref):
    acc = jnp.dot(wf_ref[...], feat_ref[...], preferred_element_type=jnp.float32)
    o_ref[...] = jnp.maximum(acc + bf_ref[...], 0.0)


def fuse_1x1_bn_relu(feat, wf, bf, *, tm=256, tn=512):
    """relu(wf @ feat[b] + bf) per batch.  feat:(B,Ctot,Wout), wf:(out_ch,Ctot)."""
    B, Ctot, Wout = (int(d) for d in feat.shape)
    out_ch = int(wf.shape[0])
    tm = out_ch if out_ch <= tm else tm
    tn = Wout if Wout <= tn else tn
    grid = (B, pl.cdiv(out_ch, tm), pl.cdiv(Wout, tn))
    return pl.pallas_call(
        _fuse_kernel,
        out_shape=jax.ShapeDtypeStruct((B, out_ch, Wout), jnp.float32),
        grid=grid,
        in_specs=[
            pl.BlockSpec((tm, Ctot), lambda b, m, n: (m, 0)),
            pl.BlockSpec((tm, 1), lambda b, m, n: (m, 0)),
            pl.BlockSpec((None, Ctot, tn), lambda b, m, n: (b, 0, n)),
        ],
        out_specs=pl.BlockSpec((None, tm, tn), lambda b, m, n: (b, m, n)),
        compiler_params=pltpu.CompilerParams(
            dimension_semantics=("parallel", "parallel", "parallel"),
            vmem_limit_bytes=_VMEM_LIMIT),
    )(wf, bf, feat)


# --------------------------------- top level ---------------------------------

def efficient_height_reduction(conv_list, params, scales):
    outs = [ecc_branch(x, bp, s)
            for x, bp, s in zip(conv_list, params['branches'], scales)]
    feat = jnp.concatenate(outs, axis=1)                  # (B, Ctot, Wout)
    wf = params['fuse']['w'][:, :, 0, 0] * params['fuse']['scale'][:, None]
    bf = params['fuse']['bias'].reshape(-1, 1)
    feat1d = fuse_1x1_bn_relu(feat, wf, bf)               # (B, out_ch, Wout)
    return {'1D': feat1d, 'conv_list': conv_list}


# --------------------------- deterministic params ----------------------------

def _fold_bn(key, c):
    kg, kb, km, kv = jax.random.split(key, 4)
    gamma = 1.0 + 0.1 * jax.random.normal(kg, (c,), jnp.float32)
    beta = 0.1 * jax.random.normal(kb, (c,), jnp.float32)
    mean = 0.1 * jax.random.normal(km, (c,), jnp.float32)
    var = jax.random.uniform(kv, (c,), jnp.float32, 0.5, 1.5)
    scale = gamma / jnp.sqrt(var + 1e-5)
    bias = beta - mean * scale
    return scale, bias


def make_params(key, cs, heights, out_ch):
    params = {'branches': []}
    keys = jax.random.split(key, len(cs) + 1)
    for i, (cin, h) in enumerate(zip(cs, heights)):
        cout = cin // 4
        k = jax.random.split(keys[i], 5)
        w1 = 0.1 * jax.random.normal(k[0], (cout, cin, 3, 3), jnp.float32)
        s1, b1 = _fold_bn(k[1], cout)
        w2 = 0.1 * jax.random.normal(k[2], (cout, cout, 3, 3), jnp.float32)
        s2, b2 = _fold_bn(k[3], cout)
        # torch depthwise weight (cout, 1, h, 1), stored squeezed as (cout, h)
        wdw = 0.1 * jax.random.normal(k[4], (cout, h), jnp.float32)
        params['branches'].append(
            dict(w1=w1, s1=s1, b1=b1, w2=w2, s2=s2, b2=b2, wdw=wdw))
    ctot = sum(c // 4 for c in cs)
    kf = jax.random.split(keys[-1], 2)
    wf = 0.1 * jax.random.normal(kf[0], (out_ch, ctot, 1, 1), jnp.float32)
    sf, bf = _fold_bn(kf[1], out_ch)
    params['fuse'] = dict(w=wf, scale=sf, bias=bf)
    return params


# ----------------------- pure-JAX reference (checking) -----------------------

def _ref_forward(conv_list, params, scales):
    hp = jax.lax.Precision.HIGHEST

    def conv(x, w, pad, groups=1):
        return jax.lax.conv_general_dilated(
            x, w, window_strides=(1, 1), padding=pad,
            dimension_numbers=('NCHW', 'OIHW', 'NCHW'),
            feature_group_count=groups, precision=hp)

    outs = []
    for x, bp, s in zip(conv_list, params['branches'], scales):
        y = conv(x, bp['w1'], ((1, 1), (1, 1)))
        y = jnp.maximum(y * bp['s1'][None, :, None, None]
                        + bp['b1'][None, :, None, None], 0.0)
        y = jnp.repeat(y, s, axis=3)
        y = conv(y, bp['w2'], ((1, 1), (1, 1)))
        y = jnp.maximum(y * bp['s2'][None, :, None, None]
                        + bp['b2'][None, :, None, None], 0.0)
        wdw = bp['wdw'][:, None, :, None]                 # (Cout, 1, H, 1)
        y = conv(y, wdw, ((0, 0), (0, 0)), groups=y.shape[1])
        outs.append(y)
    feat = jnp.concatenate(outs, axis=1)                  # (B, Ctot, 1, W)
    y = conv(feat, params['fuse']['w'], ((0, 0), (0, 0)))
    y = jnp.maximum(y * params['fuse']['scale'][None, :, None, None]
                    + params['fuse']['bias'][None, :, None, None], 0.0)
    return y[:, :, 0, :]


# ----------------------------------- main -------------------------------------

if __name__ == "__main__":
    key = jax.random.PRNGKey(0)
    B = 2
    cs = (16, 32, 64, 128)       # encoder channels; out_c = c // 4 per branch
    heights = (8, 4, 2, 1)       # feature heights (down_h per branch)
    widths = (16, 8, 4, 2)       # feature widths; scales below align them to 16
    scales = (1, 2, 4, 8)
    out_ch = 64

    kx, kp = jax.random.split(key)
    xkeys = jax.random.split(kx, 4)
    conv_list = [
        jax.random.normal(xkeys[i], (B, cs[i], heights[i], widths[i]), jnp.float32)
        for i in range(4)
    ]
    params = make_params(kp, cs, heights, out_ch)

    result = efficient_height_reduction(conv_list, params, scales)
    feat1d = jax.block_until_ready(result['1D'])
    assert feat1d.shape == (B, out_ch, widths[0] * scales[0]), feat1d.shape

    ref = _ref_forward(conv_list, params, scales)
    err = float(jnp.max(jnp.abs(feat1d - ref)))
    assert jnp.allclose(feat1d, ref, rtol=2e-2, atol=2e-2), err

    print("KERNEL_OK")
</pallas_src>

<mosaic_0001>
module attributes {stable_mosaic.version = 11 : i64} {
  func.func @kernel(%arg0: i32, %arg1: memref<1x16x256xf32, #tpu.memory_space<vmem>>, %arg2: memref<9x4x16xf32, #tpu.memory_space<vmem>>, %arg3: memref<4x1xf32, #tpu.memory_space<vmem>>, %arg4: memref<144x256xf32, #tpu.memory_space<vmem>>, %arg5: memref<9x4x4xf32, #tpu.memory_space<vmem>>, %arg6: memref<4x1xf32, #tpu.memory_space<vmem>>, %arg7: memref<4x8xf32, #tpu.memory_space<vmem>>, %arg8: memref<1x4x16xf32, #tpu.memory_space<vmem>>, %arg9: memref<4x256xf32, #tpu.memory_space<vmem>>, %arg10: memref<4x144xf32, #tpu.memory_space<vmem>>) attributes {dimension_semantics = [#tpu.dimension_semantics<parallel>], iteration_bounds = array<i64: 2>, scalar_prefetch = 0 : i64, scratch_operands = 2 : i64, tpu.core_type = #tpu.core_type<tc>, window_params = [{transform_indices = @transform_0, window_bounds = array<i64: 1, 16, 256>}, {pipeline_mode = #tpu.pipeline_mode<synchronous>, transform_indices = @transform_1, window_bounds = array<i64: 9, 4, 16>}, {pipeline_mode = #tpu.pipeline_mode<synchronous>, transform_indices = @transform_2, window_bounds = array<i64: 4, 1>}, {pipeline_mode = #tpu.pipeline_mode<synchronous>, transform_indices = @transform_3, window_bounds = array<i64: 144, 256>}, {pipeline_mode = #tpu.pipeline_mode<synchronous>, transform_indices = @transform_4, window_bounds = array<i64: 9, 4, 4>}, {pipeline_mode = #tpu.pipeline_mode<synchronous>, transform_indices = @transform_5, window_bounds = array<i64: 4, 1>}, {pipeline_mode = #tpu.pipeline_mode<synchronous>, transform_indices = @transform_6, window_bounds = array<i64: 4, 8>}, {transform_indices = @transform_7, window_bounds = array<i64: 1, 4, 16>}]} {
    %cst = arith.constant 0.000000e+00 : f32
    %0 = vector.broadcast %cst : f32 to vector<4x144xf32>
    %c0 = arith.constant 0 : index
    %c0_0 = arith.constant 0 : index
    %c0_1 = arith.constant 0 : index
    %1 = vector.load %arg1[%c0, %c0_0, %c0_1] : memref<1x16x256xf32, #tpu.memory_space<vmem>>, vector<1x16x144xf32>
    %2 = vector.shape_cast %1 : vector<1x16x144xf32> to vector<16x144xf32>
    %c0_2 = arith.constant 0 : index
    %c0_3 = arith.constant 0 : index
    %c0_4 = arith.constant 0 : index
    %3 = vector.load %arg2[%c0_2, %c0_3, %c0_4] : memref<9x4x16xf32, #tpu.memory_space<vmem>>, vector<1x4x16xf32>
    %4 = vector.shape_cast %3 : vector<1x4x16xf32> to vector<4x16xf32>
    %cst_5 = arith.constant dense<0.000000e+00> : vector<4x144xf32>
    %5 = tpu.matmul %4, %2, %cst_5 {dimension_numbers = #tpu.dot_dimension_numbers<[1], [0], [0], [1], [0, 0, 1, 1], [], []>} : vector<4x16xf32>, vector<16x144xf32>, vector<4x144xf32> -> vector<4x144xf32>
    %6 = arith.addf %0, %5 : vector<4x144xf32>
    %c0_6 = arith.constant 0 : index
    %c0_7 = arith.constant 0 : index
    %c1 = arith.constant 1 : index
    %7 = vector.load %arg1[%c0_6, %c0_7, %c1] : memref<1x16x256xf32, #tpu.memory_space<vmem>>, vector<1x16x144xf32>
    %8 = vector.shape_cast %7 : vector<1x16x144xf32> to vector<16x144xf32>
    %c1_8 = arith.constant 1 : index
    %c0_9 = arith.constant 0 : index
    %c0_10 = arith.constant 0 : index
    %9 = vector.load %arg2[%c1_8, %c0_9, %c0_10] : memref<9x4x16xf32, #tpu.memory_space<vmem>>, vector<1x4x16xf32>
    %10 = vector.shape_cast %9 : vector<1x4x16xf32> to vector<4x16xf32>
    %cst_11 = arith.constant dense<0.000000e+00> : vector<4x144xf32>
    %11 = tpu.matmul %10, %8, %cst_11 {dimension_numbers = #tpu.dot_dimension_numbers<[1], [0], [0], [1], [0, 0, 1, 1], [], []>} : vector<4x16xf32>, vector<16x144xf32>, vector<4x144xf32> -> vector<4x144xf32>
    %12 = arith.addf %6, %11 : vector<4x144xf32>
    %c0_12 = arith.constant 0 : index
    %c0_13 = arith.constant 0 : index
    %c2 = arith.constant 2 : index
    %13 = vector.load %arg1[%c0_12, %c0_13, %c2] : memref<1x16x256xf32, #tpu.memory_space<vmem>>, vector<1x16x144xf32>
    %14 = vector.shape_cast %13 : vector<1x16x144xf32> to vector<16x144xf32>
    %c2_14 = arith.constant 2 : index
    %c0_15 = arith.constant 0 : index
    %c0_16 = arith.constant 0 : index
    %15 = vector.load %arg2[%c2_14, %c0_15, %c0_16] : memref<9x4x16xf32, #tpu.memory_space<vmem>>, vector<1x4x16xf32>
    %16 = vector.shape_cast %15 : vector<1x4x16xf32> to vector<4x16xf32>
    %cst_17 = arith.constant dense<0.000000e+00> : vector<4x144xf32>
    %17 = tpu.matmul %16, %14, %cst_17 {dimension_numbers = #tpu.dot_dimension_numbers<[1], [0], [0], [1], [0, 0, 1, 1], [], []>} : vector<4x16xf32>, vector<16x144xf32>, vector<4x144xf32> -> vector<4x144xf32>
    %18 = arith.addf %12, %17 : vector<4x144xf32>
    %c0_18 = arith.constant 0 : index
    %c0_19 = arith.constant 0 : index
    %c18 = arith.constant 18 : index
    %19 = vector.load %arg1[%c0_18, %c0_19, %c18] : memref<1x16x256xf32, #tpu.memory_space<vmem>>, vector<1x16x144xf32>
    %20 = vector.shape_cast %19 : vector<1x16x144xf32> to vector<16x144xf32>
    %c3 = arith.constant 3 : index
    %c0_20 = arith.constant 0 : index
    %c0_21 = arith.constant 0 : index
    %21 = vector.load %arg2[%c3, %c0_20, %c0_21] : memref<9x4x16xf32, #tpu.memory_space<vmem>>, vector<1x4x16xf32>
    %22 = vector.shape_cast %21 : vector<1x4x16xf32> to vector<4x16xf32>
    %cst_22 = arith.constant dense<0.000000e+00> : vector<4x144xf32>
    %23 = tpu.matmul %22, %20, %cst_22 {dimension_numbers = #tpu.dot_dimension_numbers<[1], [0], [0], [1], [0, 0, 1, 1], [], []>} : vector<4x16xf32>, vector<16x144xf32>, vector<4x144xf32> -> vector<4x144xf32>
    %24 = arith.addf %18, %23 : vector<4x144xf32>
    %c0_23 = arith.constant 0 : index
    %c0_24 = arith.constant 0 : index
    %c19 = arith.constant 19 : index
    %25 = vector.load %arg1[%c0_23, %c0_24, %c19] : memref<1x16x256xf32, #tpu.memory_space<vmem>>, vector<1x16x144xf32>
    %26 = vector.shape_cast %25 : vector<1x16x144xf32> to vector<16x144xf32>
    %c4 = arith.constant 4 : index
    %c0_25 = arith.constant 0 : index
    %c0_26 = arith.constant 0 : index
    %27 = vector.load %arg2[%c4, %c0_25, %c0_26] : memref<9x4x16xf32, #tpu.memory_space<vmem>>, vector<1x4x16xf32>
    %28 = vector.shape_cast %27 : vector<1x4x16xf32> to vector<4x16xf32>
    %cst_27 = arith.constant dense<0.000000e+00> : vector<4x144xf32>
    %29 = tpu.matmul %28, %26, %cst_27 {dimension_numbers = #tpu.dot_dimension_numbers<[1], [0], [0], [1], [0, 0, 1, 1], [], []>} : vector<4x16xf32>, vector<16x144xf32>, vector<4x144xf32> -> vector<4x144xf32>
    %30 = arith.addf %24, %29 : vector<4x144xf32>
    %c0_28 = arith.constant 0 : index
    %c0_29 = arith.constant 0 : index
    %c20 = arith.constant 20 : index
    %31 = vector.load %arg1[%c0_28, %c0_29, %c20] : memref<1x16x256xf32, #tpu.memory_space<vmem>>, vector<1x16x144xf32>
    %32 = vector.shape_cast %31 : vector<1x16x144xf32> to vector<16x144xf32>
    %c5 = arith.constant 5 : index
    %c0_30 = arith.constant 0 : index
    %c0_31 = arith.constant 0 : index
    %33 = vector.load %arg2[%c5, %c0_30, %c0_31] : memref<9x4x16xf32, #tpu.memory_space<vmem>>, vector<1x4x16xf32>
    %34 = vector.shape_cast %33 : vector<1x4x16xf32> to vector<4x16xf32>
    %cst_32 = arith.constant dense<0.000000e+00> : vector<4x144xf32>
    %35 = tpu.matmul %34, %32, %cst_32 {dimension_numbers = #tpu.dot_dimension_numbers<[1], [0], [0], [1], [0, 0, 1, 1], [], []>} : vector<4x16xf32>, vector<16x144xf32>, vector<4x144xf32> -> vector<4x144xf32>
    %36 = arith.addf %30, %35 : vector<4x144xf32>
    %c0_33 = arith.constant 0 : index
    %c0_34 = arith.constant 0 : index
    %c36 = arith.constant 36 : index
    %37 = vector.load %arg1[%c0_33, %c0_34, %c36] : memref<1x16x256xf32, #tpu.memory_space<vmem>>, vector<1x16x144xf32>
    %38 = vector.shape_cast %37 : vector<1x16x144xf32> to vector<16x144xf32>
    %c6 = arith.constant 6 : index
    %c0_35 = arith.constant 0 : index
    %c0_36 = arith.constant 0 : index
    %39 = vector.load %arg2[%c6, %c0_35, %c0_36] : memref<9x4x16xf32, #tpu.memory_space<vmem>>, vector<1x4x16xf32>
    %40 = vector.shape_cast %39 : vector<1x4x16xf32> to vector<4x16xf32>
    %cst_37 = arith.constant dense<0.000000e+00> : vector<4x144xf32>
    %41 = tpu.matmul %40, %38, %cst_37 {dimension_numbers = #tpu.dot_dimension_numbers<[1], [0], [0], [1], [0, 0, 1, 1], [], []>} : vector<4x16xf32>, vector<16x144xf32>, vector<4x144xf32> -> vector<4x144xf32>
    %42 = arith.addf %36, %41 : vector<4x144xf32>
    %c0_38 = arith.constant 0 : index
    %c0_39 = arith.constant 0 : index
    %c37 = arith.constant 37 : index
    %43 = vector.load %arg1[%c0_38, %c0_39, %c37] : memref<1x16x256xf32, #tpu.memory_space<vmem>>, vector<1x16x144xf32>
    %44 = vector.shape_cast %43 : vector<1x16x144xf32> to vector<16x144xf32>
    %c7 = arith.constant 7 : index
    %c0_40 = arith.constant 0 : index
    %c0_41 = arith.constant 0 : index
    %45 = vector.load %arg2[%c7, %c0_40, %c0_41] : memref<9x4x16xf32, #tpu.memory_space<vmem>>, vector<1x4x16xf32>
    %46 = vector.shape_cast %45 : vector<1x4x16xf32> to vector<4x16xf32>
    %cst_42 = arith.constant dense<0.000000e+00> : vector<4x144xf32>
    %47 = tpu.matmul %46, %44, %cst_42 {dimension_numbers = #tpu.dot_dimension_numbers<[1], [0], [0], [1], [0, 0, 1, 1], [], []>} : vector<4x16xf32>, vector<16x144xf32>, vector<4x144xf32> -> vector<4x144xf32>
    %48 = arith.addf %42, %47 : vector<4x144xf32>
    %c0_43 = arith.constant 0 : index
    %c0_44 = arith.constant 0 : index
    %c38 = arith.constant 38 : index
    %49 = vector.load %arg1[%c0_43, %c0_44, %c38] : memref<1x16x256xf32, #tpu.memory_space<vmem>>, vector<1x16x144xf32>
    %50 = vector.shape_cast %49 : vector<1x16x144xf32> to vector<16x144xf32>
    %c8 = arith.constant 8 : index
    %c0_45 = arith.constant 0 : index
    %c0_46 = arith.constant 0 : index
    %51 = vector.load %arg2[%c8, %c0_45, %c0_46] : memref<9x4x16xf32, #tpu.memory_space<vmem>>, vector<1x4x16xf32>
    %52 = vector.shape_cast %51 : vector<1x4x16xf32> to vector<4x16xf32>
    %cst_47 = arith.constant dense<0.000000e+00> : vector<4x144xf32>
    %53 = tpu.matmul %52, %50, %cst_47 {dimension_numbers = #tpu.dot_dimension_numbers<[1], [0], [0], [1], [0, 0, 1, 1], [], []>} : vector<4x16xf32>, vector<16x144xf32>, vector<4x144xf32> -> vector<4x144xf32>
    %54 = arith.addf %48, %53 : vector<4x144xf32>
    %c0_48 = arith.constant 0 : index
    %c0_49 = arith.constant 0 : index
    %55 = vector.load %arg3[%c0_48, %c0_49] : memref<4x1xf32, #tpu.memory_space<vmem>>, vector<4x1xf32>
    %56 = vector.broadcast %55 : vector<4x1xf32> to vector<4x144xf32>
    %57 = arith.addf %54, %56 : vector<4x144xf32>
    %cst_50 = arith.constant 0.000000e+00 : f32
    %58 = vector.broadcast %cst_50 : f32 to vector<4x144xf32>
    %59 = arith.maximumf %57, %58 : vector<4x144xf32>
    %c0_51 = arith.constant 0 : index
    %c0_52 = arith.constant 0 : index
    %60 = vector.load %arg4[%c0_51, %c0_52] : memref<144x256xf32, #tpu.memory_space<vmem>>, vector<144x256xf32>
    %cst_53 = arith.constant dense<0.000000e+00> : vector<4x256xf32>
    %61 = tpu.matmul %59, %60, %cst_53 {dimension_numbers = #tpu.dot_dimension_numbers<[1], [0], [0], [1], [0, 0, 1, 1], [], []>} : vector<4x144xf32>, vector<144x256xf32>, vector<4x256xf32> -> vector<4x256xf32>
    %c0_54 = arith.constant 0 : index
    %c0_55 = arith.constant 0 : index
    %62 = vector.load %arg9[%c0_54, %c0_55] : memref<4x256xf32, #tpu.memory_space<vmem>>, vector<4x256xf32>
    tpu.vector_store %arg9[%c0_54, %c0_55], %61 {strides = array<i32>} : memref<4x256xf32, #tpu.memory_space<vmem>>, vector<4x256xf32>,
    %cst_56 = arith.constant 0.000000e+00 : f32
    %63 = vector.broadcast %cst_56 : f32 to vector<4x144xf32>
    %c0_57 = arith.constant 0 : index
    %c0_58 = arith.constant 0 : index
    %64 = vector.load %arg9[%c0_57, %c0_58] : memref<4x256xf32, #tpu.memory_space<vmem>>, vector<4x144xf32>
    %c0_59 = arith.constant 0 : index
    %c0_60 = arith.constant 0 : index
    %c0_61 = arith.constant 0 : index
    %65 = vector.load %arg5[%c0_59, %c0_60, %c0_61] : memref<9x4x4xf32, #tpu.memory_space<vmem>>, vector<1x4x4xf32>
    %66 = vector.shape_cast %65 : vector<1x4x4xf32> to vector<4x4xf32>
    %cst_62 = arith.constant dense<0.000000e+00> : vector<4x144xf32>
    %67 = tpu.matmul %66, %64, %cst_62 {dimension_numbers = #tpu.dot_dimension_numbers<[1], [0], [0], [1], [0, 0, 1, 1], [], []>} : vector<4x4xf32>, vector<4x144xf32>, vector<4x144xf32> -> vector<4x144xf32>
    %68 = arith.addf %63, %67 : vector<4x144xf32>
    %c0_63 = arith.constant 0 : index
    %c1_64 = arith.constant 1 : index
    %69 = vector.load %arg9[%c0_63, %c1_64] : memref<4x256xf32, #tpu.memory_space<vmem>>, vector<4x144xf32>
    %c1_65 = arith.constant 1 : index
    %c0_66 = arith.constant 0 : index
    %c0_67 = arith.constant 0 : index
    %70 = vector.load %arg5[%c1_65, %c0_66, %c0_67] : memref<9x4x4xf32, #tpu.memory_space<vmem>>, vector<1x4x4xf32>
    %71 = vector.shape_cast %70 : vector<1x4x4xf32> to vector<4x4xf32>
    %cst_68 = arith.constant dense<0.000000e+00> : vector<4x144xf32>
    %72 = tpu.matmul %71, %69, %cst_68 {dimension_numbers = #tpu.dot_dimension_numbers<[1], [0], [0], [1], [0, 0, 1, 1], [], []>} : vector<4x4xf32>, vector<4x144xf32>, vector<4x144xf32> -> vector<4x144xf32>
    %73 = arith.addf %68, %72 : vector<4x144xf32>
    %c0_69 = arith.constant 0 : index
    %c2_70 = arith.constant 2 : index
    %74 = vector.load %arg9[%c0_69, %c2_70] : memref<4x256xf32, #tpu.memory_space<vmem>>, vector<4x144xf32>
    %c2_71 = arith.constant 2 : index
    %c0_72 = arith.constant 0 : index
    %c0_73 = arith.constant 0 : index
    %75 = vector.load %arg5[%c2_71, %c0_72, %c0_73] : memref<9x4x4xf32, #tpu.memory_space<vmem>>, vector<1x4x4xf32>
    %76 = vector.shape_cast %75 : vector<1x4x4xf32> to vector<4x4xf32>
    %cst_74 = arith.constant dense<0.000000e+00> : vector<4x144xf32>
    %77 = tpu.matmul %76, %74, %cst_74 {dimension_numbers = #tpu.dot_dimension_numbers<[1], [0], [0], [1], [0, 0, 1, 1], [], []>} : vector<4x4xf32>, vector<4x144xf32>, vector<4x144xf32> -> vector<4x144xf32>
    %78 = arith.addf %73, %77 : vector<4x144xf32>
    %c0_75 = arith.constant 0 : index
    %c18_76 = arith.constant 18 : index
    %79 = vector.load %arg9[%c0_75, %c18_76] : memref<4x256xf32, #tpu.memory_space<vmem>>, vector<4x144xf32>
    %c3_77 = arith.constant 3 : index
    %c0_78 = arith.constant 0 : index
    %c0_79 = arith.constant 0 : index
    %80 = vector.load %arg5[%c3_77, %c0_78, %c0_79] : memref<9x4x4xf32, #tpu.memory_space<vmem>>, vector<1x4x4xf32>
    %81 = vector.shape_cast %80 : vector<1x4x4xf32> to vector<4x4xf32>
    %cst_80 = arith.constant dense<0.000000e+00> : vector<4x144xf32>
    %82 = tpu.matmul %81, %79, %cst_80 {dimension_numbers = #tpu.dot_dimension_numbers<[1], [0], [0], [1], [0, 0, 1, 1], [], []>} : vector<4x4xf32>, vector<4x144xf32>, vector<4x144xf32> -> vector<4x144xf32>
    %83 = arith.addf %78, %82 : vector<4x144xf32>
    %c0_81 = arith.constant 0 : index
    %c19_82 = arith.constant 19 : index
    %84 = vector.load %arg9[%c0_81, %c19_82] : memref<4x256xf32, #tpu.memory_space<vmem>>, vector<4x144xf32>
    %c4_83 = arith.constant 4 : index
    %c0_84 = arith.constant 0 : index
    %c0_85 = arith.constant 0 : index
    %85 = vector.load %arg5[%c4_83, %c0_84, %c0_85] : memref<9x4x4xf32, #tpu.memory_space<vmem>>, vector<1x4x4xf32>
    %86 = vector.shape_cast %85 : vector<1x4x4xf32> to vector<4x4xf32>
    %cst_86 = arith.constant dense<0.000000e+00> : vector<4x144xf32>
    %87 = tpu.matmul %86, %84, %cst_86 {dimension_numbers = #tpu.dot_dimension_numbers<[1], [0], [0], [1], [0, 0, 1, 1], [], []>} : vector<4x4xf32>, vector<4x144xf32>, vector<4x144xf32> -> vector<4x144xf32>
    %88 = arith.addf %83, %87 : vector<4x144xf32>
    %c0_87 = arith.constant 0 : index
    %c20_88 = arith.constant 20 : index
    %89 = vector.load %arg9[%c0_87, %c20_88] : memref<4x256xf32, #tpu.memory_space<vmem>>, vector<4x144xf32>
    %c5_89 = arith.constant 5 : index
    %c0_90 = arith.constant 0 : index
    %c0_91 = arith.constant 0 : index
    %90 = vector.load %arg5[%c5_89, %c0_90, %c0_91] : memref<9x4x4xf32, #tpu.memory_space<vmem>>, vector<1x4x4xf32>
    %91 = vector.shape_cast %90 : vector<1x4x4xf32> to vector<4x4xf32>
    %cst_92 = arith.constant dense<0.000000e+00> : vector<4x144xf32>
    %92 = tpu.matmul %91, %89, %cst_92 {dimension_numbers = #tpu.dot_dimension_numbers<[1], [0], [0], [1], [0, 0, 1, 1], [], []>} : vector<4x4xf32>, vector<4x144xf32>, vector<4x144xf32> -> vector<4x144xf32>
    %93 = arith.addf %88, %92 : vector<4x144xf32>
    %c0_93 = arith.constant 0 : index
    %c36_94 = arith.constant 36 : index
    %94 = vector.load %arg9[%c0_93, %c36_94] : memref<4x256xf32, #tpu.memory_space<vmem>>, vector<4x144xf32>
    %c6_95 = arith.constant 6 : index
    %c0_96 = arith.constant 0 : index
    %c0_97 = arith.constant 0 : index
    %95 = vector.load %arg5[%c6_95, %c0_96, %c0_97] : memref<9x4x4xf32, #tpu.memory_space<vmem>>, vector<1x4x4xf32>
    %96 = vector.shape_cast %95 : vector<1x4x4xf32> to vector<4x4xf32>
    %cst_98 = arith.constant dense<0.000000e+00> : vector<4x144xf32>
    %97 = tpu.matmul %96, %94, %cst_98 {dimension_numbers = #tpu.dot_dimension_numbers<[1], [0], [0], [1], [0, 0, 1, 1], [], []>} : vector<4x4xf32>, vector<4x144xf32>, vector<4x144xf32> -> vector<4x144xf32>
    %98 = arith.addf %93, %97 : vector<4x144xf32>
    %c0_99 = arith.constant 0 : index
    %c37_100 = arith.constant 37 : index
    %99 = vector.load %arg9[%c0_99, %c37_100] : memref<4x256xf32, #tpu.memory_space<vmem>>, vector<4x144xf32>
    %c7_101 = arith.constant 7 : index
    %c0_102 = arith.constant 0 : index
    %c0_103 = arith.constant 0 : index
    %100 = vector.load %arg5[%c7_101, %c0_102, %c0_103] : memref<9x4x4xf32, #tpu.memory_space<vmem>>, vector<1x4x4xf32>
    %101 = vector.shape_cast %100 : vector<1x4x4xf32> to vector<4x4xf32>
    %cst_104 = arith.constant dense<0.000000e+00> : vector<4x144xf32>
    %102 = tpu.matmul %101, %99, %cst_104 {dimension_numbers = #tpu.dot_dimension_numbers<[1], [0], [0], [1], [0, 0, 1, 1], [], []>} : vector<4x4xf32>, vector<4x144xf32>, vector<4x144xf32> -> vector<4x144xf32>
    %103 = arith.addf %98, %102 : vector<4x144xf32>
    %c0_105 = arith.constant 0 : index
    %c38_106 = arith.constant 38 : index
    %104 = vector.load %arg9[%c0_105, %c38_106] : memref<4x256xf32, #tpu.memory_space<vmem>>, vector<4x144xf32>
    %c8_107 = arith.constant 8 : index
    %c0_108 = arith.constant 0 : index
    %c0_109 = arith.constant 0 : index
    %105 = vector.load %arg5[%c8_107, %c0_108, %c0_109] : memref<9x4x4xf32, #tpu.memory_space<vmem>>, vector<1x4x4xf32>
    %106 = vector.shape_cast %105 : vector<1x4x4xf32> to vector<4x4xf32>
    %cst_110 = arith.constant dense<0.000000e+00> : vector<4x144xf32>
    %107 = tpu.matmul %106, %104, %cst_110 {dimension_numbers = #tpu.dot_dimension_numbers<[1], [0], [0], [1], [0, 0, 1, 1], [], []>} : vector<4x4xf32>, vector<4x144xf32>, vector<4x144xf32> -> vector<4x144xf32>
    %108 = arith.addf %103, %107 : vector<4x144xf32>
    %c0_111 = arith.constant 0 : index
    %c0_112 = arith.constant 0 : index
    %109 = vector.load %arg6[%c0_111, %c0_112] : memref<4x1xf32, #tpu.memory_space<vmem>>, vector<4x1xf32>
    %110 = vector.broadcast %109 : vector<4x1xf32> to vector<4x144xf32>
    %111 = arith.addf %108, %110 : vector<4x144xf32>
    %cst_113 = arith.constant 0.000000e+00 : f32
    %112 = vector.broadcast %cst_113 : f32 to vector<4x144xf32>
    %113 = arith.maximumf %111, %112 : vector<4x144xf32>
    %c0_114 = arith.constant 0 : index
    %c0_115 = arith.constant 0 : index
    %114 = vector.load %arg10[%c0_114, %c0_115] : memref<4x144xf32, #tpu.memory_space<vmem>>, vector<4x144xf32>
    tpu.vector_store %arg10[%c0_114, %c0_115], %113 {strides = array<i32>} : memref<4x144xf32, #tpu.memory_space<vmem>>, vector<4x144xf32>,
    %cst_116 = arith.constant 0.000000e+00 : f32
    %115 = vector.broadcast %cst_116 : f32 to vector<4x16xf32>
    %c0_117 = arith.constant 0 : index
    %c0_118 = arith.constant 0 : index
    %116 = vector.load %arg7[%c0_117, %c0_118] : memref<4x8xf32, #tpu.memory_space<vmem>>, vector<4x1xf32>
    %c0_119 = arith.constant 0 : index
    %c0_120 = arith.constant 0 : index
    %117 = vector.load %arg10[%c0_119, %c0_120] : memref<4x144xf32, #tpu.memory_space<vmem>>, vector<4x16xf32>
    %118 = vector.broadcast %116 : vector<4x1xf32> to vector<4x16xf32>
    %119 = arith.mulf %118, %117 : vector<4x16xf32>
    %120 = arith.addf %115, %119 : vector<4x16xf32>
    %c0_121 = arith.constant 0 : index
    %c1_122 = arith.constant 1 : index
    %121 = vector.load %arg7[%c0_121, %c1_122] : memref<4x8xf32, #tpu.memory_space<vmem>>, vector<4x1xf32>
    %c0_123 = arith.constant 0 : index
    %c18_124 = arith.constant 18 : index
    %122 = vector.load %arg10[%c0_123, %c18_124] : memref<4x144xf32, #tpu.memory_space<vmem>>, vector<4x16xf32>
    %123 = vector.broadcast %121 : vector<4x1xf32> to vector<4x16xf32>
    %124 = arith.mulf %123, %122 : vector<4x16xf32>
    %125 = arith.addf %120, %124 : vector<4x16xf32>
    %c0_125 = arith.constant 0 : index
    %c2_126 = arith.constant 2 : index
    %126 = vector.load %arg7[%c0_125, %c2_126] : memref<4x8xf32, #tpu.memory_space<vmem>>, vector<4x1xf32>
    %c0_127 = arith.constant 0 : index
    %c36_128 = arith.constant 36 : index
    %127 = vector.load %arg10[%c0_127, %c36_128] : memref<4x144xf32, #tpu.memory_space<vmem>>, vector<4x16xf32>
    %128 = vector.broadcast %126 : vector<4x1xf32> to vector<4x16xf32>
    %129 = arith.mulf %128, %127 : vector<4x16xf32>
    %130 = arith.addf %125, %129 : vector<4x16xf32>
    %c0_129 = arith.constant 0 : index
    %c3_130 = arith.constant 3 : index
    %131 = vector.load %arg7[%c0_129, %c3_130] : memref<4x8xf32, #tpu.memory_space<vmem>>, vector<4x1xf32>
    %c0_131 = arith.constant 0 : index
    %c54 = arith.constant 54 : index
    %132 = vector.load %arg10[%c0_131, %c54] : memref<4x144xf32, #tpu.memory_space<vmem>>, vector<4x16xf32>
    %133 = vector.broadcast %131 : vector<4x1xf32> to vector<4x16xf32>
    %134 = arith.mulf %133, %132 : vector<4x16xf32>
    %135 = arith.addf %130, %134 : vector<4x16xf32>
    %c0_132 = arith.constant 0 : index
    %c4_133 = arith.constant 4 : index
    %136 = vector.load %arg7[%c0_132, %c4_133] : memref<4x8xf32, #tpu.memory_space<vmem>>, vector<4x1xf32>
    %c0_134 = arith.constant 0 : index
    %c72 = arith.constant 72 : index
    %137 = vector.load %arg10[%c0_134, %c72] : memref<4x144xf32, #tpu.memory_space<vmem>>, vector<4x16xf32>
    %138 = vector.broadcast %136 : vector<4x1xf32> to vector<4x16xf32>
    %139 = arith.mulf %138, %137 : vector<4x16xf32>
    %140 = arith.addf %135, %139 : vector<4x16xf32>
    %c0_135 = arith.constant 0 : index
    %c5_136 = arith.constant 5 : index
    %141 = vector.load %arg7[%c0_135, %c5_136] : memref<4x8xf32, #tpu.memory_space<vmem>>, vector<4x1xf32>
    %c0_137 = arith.constant 0 : index
    %c90 = arith.constant 90 : index
    %142 = vector.load %arg10[%c0_137, %c90] : memref<4x144xf32, #tpu.memory_space<vmem>>, vector<4x16xf32>
    %143 = vector.broadcast %141 : vector<4x1xf32> to vector<4x16xf32>
    %144 = arith.mulf %143, %142 : vector<4x16xf32>
    %145 = arith.addf %140, %144 : vector<4x16xf32>
    %c0_138 = arith.constant 0 : index
    %c6_139 = arith.constant 6 : index
    %146 = vector.load %arg7[%c0_138, %c6_139] : memref<4x8xf32, #tpu.memory_space<vmem>>, vector<4x1xf32>
    %c0_140 = arith.constant 0 : index
    %c108 = arith.constant 108 : index
    %147 = vector.load %arg10[%c0_140, %c108] : memref<4x144xf32, #tpu.memory_space<vmem>>, vector<4x16xf32>
    %148 = vector.broadcast %146 : vector<4x1xf32> to vector<4x16xf32>
    %149 = arith.mulf %148, %147 : vector<4x16xf32>
    %150 = arith.addf %145, %149 : vector<4x16xf32>
    %c0_141 = arith.constant 0 : index
    %c7_142 = arith.constant 7 : index
    %151 = vector.load %arg7[%c0_141, %c7_142] : memref<4x8xf32, #tpu.memory_space<vmem>>, vector<4x1xf32>
    %c0_143 = arith.constant 0 : index
    %c126 = arith.constant 126 : index
    %152 = vector.load %arg10[%c0_143, %c126] : memref<4x144xf32, #tpu.memory_space<vmem>>, vector<4x16xf32>
    %153 = vector.broadcast %151 : vector<4x1xf32> to vector<4x16xf32>
    %154 = arith.mulf %153, %152 : vector<4x16xf32>
    %155 = arith.addf %150, %154 : vector<4x16xf32>
    %c0_144 = arith.constant 0 : index
    %c0_145 = arith.constant 0 : index
    %c0_146 = arith.constant 0 : index
    %156 = vector.load %arg8[%c0_144, %c0_145, %c0_146] : memref<1x4x16xf32, #tpu.memory_space<vmem>>, vector<1x4x16xf32>
    %157 = vector.shape_cast %156 : vector<1x4x16xf32> to vector<4x16xf32>
    %158 = vector.shape_cast %155 : vector<4x16xf32> to vector<1x4x16xf32>
    tpu.vector_store %arg8[%c0_144, %c0_145, %c0_146], %158 {strides = array<i32>} : memref<1x4x16xf32, #tpu.memory_space<vmem>>, vector<1x4x16xf32>,
    return
  }
  func.func @transform_0(%arg0: i32) -> (i32, i32, i32) {
    %c0_i32 = arith.constant 0 : i32
    %c0_i32_0 = arith.constant 0 : i32
    %c0_i32_1 = arith.constant 0 : i32
    return %arg0, %c0_i32, %c0_i32_0 : i32, i32, i32
  }
  func.func @transform_1(%arg0: i32) -> (i32, i32, i32) {
    %c0_i32 = arith.constant 0 : i32
    %c0_i32_0 = arith.constant 0 : i32
    %c0_i32_1 = arith.constant 0 : i32
    %c0_i32_2 = arith.constant 0 : i32
    return %c0_i32, %c0_i32_0, %c0_i32_1 : i32, i32, i32
  }
  func.func @transform_2(%arg0: i32) -> (i32, i32) {
    %c0_i32 = arith.constant 0 : i32
    %c0_i32_0 = arith.constant 0 : i32
    %c0_i32_1 = arith.constant 0 : i32
    return %c0_i32, %c0_i32_0 : i32, i32
  }
  func.func @transform_3(%arg0: i32) -> (i32, i32) {
    %c0_i32 = arith.constant 0 : i32
    %c0_i32_0 = arith.constant 0 : i32
    %c0_i32_1 = arith.constant 0 : i32
    return %c0_i32, %c0_i32_0 : i32, i32
  }
  func.func @transform_4(%arg0: i32) -> (i32, i32, i32) {
    %c0_i32 = arith.constant 0 : i32
    %c0_i32_0 = arith.constant 0 : i32
    %c0_i32_1 = arith.constant 0 : i32
    %c0_i32_2 = arith.constant 0 : i32
    return %c0_i32, %c0_i32_0, %c0_i32_1 : i32, i32, i32
  }
  func.func @transform_5(%arg0: i32) -> (i32, i32) {
    %c0_i32 = arith.constant 0 : i32
    %c0_i32_0 = arith.constant 0 : i32
    %c0_i32_1 = arith.constant 0 : i32
    return %c0_i32, %c0_i32_0 : i32, i32
  }
  func.func @transform_6(%arg0: i32) -> (i32, i32) {
    %c0_i32 = arith.constant 0 : i32
    %c0_i32_0 = arith.constant 0 : i32
    %c0_i32_1 = arith.constant 0 : i32
    return %c0_i32, %c0_i32_0 : i32, i32
  }
  func.func @transform_7(%arg0: i32) -> (i32, i32, i32) {
    %c0_i32 = arith.constant 0 : i32
    %c0_i32_0 = arith.constant 0 : i32
    %c0_i32_1 = arith.constant 0 : i32
    return %arg0, %c0_i32, %c0_i32_0 : i32, i32, i32
  }
}

</mosaic_0001>

<bundles_post_ra>
// kernel: tpu_custom_call.1
= control target key start
LH: loop header
LB: loop body
LE: loop exit
PB: predicated region body
PF: predicated region fallthrough
CT: control target
= control target key end

     0   :  { %s2569_s0 = inlined_call_operand.hbm [shape: f32[2,16,256], index: 0, kind: input, shape index: {}]   ;;  %s2570_s1 = inlined_call_operand.vmem [shape: f32[9,4,16], index: 1, kind: input, shape index: {}]   ;;  %s2571_s2 = inlined_call_operand.vmem [shape: f32[4,1], index: 2, kind: input, shape index: {}]   ;;  %s2572_s3 = inlined_call_operand.hbm [shape: f32[144,256], index: 3, kind: input, shape index: {}]   ;;  %s2573_s4 = inlined_call_operand.vmem [shape: f32[9,4,4], index: 4, kind: input, shape index: {}]   ;;  %s2574_s5 = inlined_call_operand.vmem [shape: f32[4,1], index: 5, kind: input, shape index: {}]   ;;  %s2575_s6 = inlined_call_operand.vmem [shape: f32[4,8], index: 6, kind: input, shape index: {}]   ;;  %s2576_s7 = inlined_call_operand.hbm [shape: f32[2,4,16], index: 7, kind: output, shape index: {}]  }
   0x1   :  { %2579 = sst [smem:[#allocation13_spill]] %s2572_s3 }
   0x2   :  { %12 = vsyncpa [#allocation5], 0 }
   0x3   :  { %14 = vsyncpa [#allocation5 + $0x1], 0 }
   0x4   :  { %15 = vsyncpa [#allocation8], 0 }
   0x5   :  { %16 = vsyncpa [#allocation6], 0 }
   0x6   :  { %18 = vsyncpa [#allocation6 + $0x1], 0  ;;  %s2222_s24 = smov 0   ;;  %s2224_s25 = smov 0  }
   0x7   :  { %s2226_s26 = smov 0   ;;  %s2228_s27 = smov 0  }
   0x8 LB: > { %s2243_s28 = sadd.s32 4294967295, %s2156_s27   ;;  %s1769_s29 = sadd.s32 4294967294, %s2156_s27   ;;  %s2156_s27 = sphi %s2228_s27, %s2592_s27   ;;  %s2152_s26 = sphi %s2226_s26, %s2591_s26   ;;  %s2148_s25 = sphi %s2224_s25, %s2590_s25   ;;  %s2144_s24 = sphi %s2222_s24, %s2589_s24  }
   0x9   : > { %p44_p0 = scmp.ne.s32.totalorder %s2148_s25, %s2144_s24  ;;  %p45_p1 = scmp.eq.s32.totalorder %s2243_s28, 0 }
   0xa   : > { %p194_p2 = scmp.eq.s32.totalorder %s2243_s28, 1  ;;  %p200_p3 = scmp.eq.s32.totalorder %s1769_s29, 1 }
   0xb   : > { %p2252_p4 = por %p45_p1, %p44_p0  ;;  %p1770_p5 = scmp.ge.s32.totalorder %s2156_s27, 1 }
   0xc   : > { %p2257_p6 = por %p200_p3, %p44_p0  ;;  %p207_p7 = scmp.lt.s32.totalorder %s2156_s27, 3 }
   0xd   : > { %s2582_s3 = sld [smem:[#allocation13_spill]]  ;;  %s2158_s13 = smov [#allocation7]  }
   0xe   : > { %p2265_p8 = pnand %p1770_p5, %p207_p7  ;;  %s226_s14 = sshll.u32 %s2158_s13, 4  ;;  %s227_s14 = int_to_ptr.vmem [resolvable:$true] %s226_s14 }
   0xf   : > { %s2275_s15 = sadd.s32 1, %s2156_s27   ;;  %s2577_s16 = smov 256  }
  0x10   : > { %p1865_p9 = pneg %p2265_p8  ;;  %s2578_s17 = smov 16  }
  0x11   : > { %s28_s18 = ssub.s32 %s2156_s27, %s2275_s15  ;;  %s31_s19 = sadd.s32 1, %s2152_s26 }
  0x12   : > { %p1866_p10 = pnand %p1865_p9, %p45_p1  ;;  %p29_p12 = scmp.eq.s32.totalorder %s28_s18, 0 }
  0x13   : > { %s224_s11 = sshll.u32 %s2582_s3, 4  ;;  %p38_p13 = scmp.ne.s32.totalorder %s2152_s26, %s2148_s25  ;;  %s225_s11 = int_to_ptr.hbm [resolvable:$true] %s224_s11 }
  0x14   : > { %1868 = dma.hbm_to_vmem [thread:$0]  (!%p1866_p10), %s225_s11, 4608, %s227_s14, [#allocation8], %s2577_s16, %s2577_s16, %s2578_s17  }
  0x15   : > { %p39_p0 = scmp.eq.s32.totalorder %s2156_s27, 0  ;;  %p2291_p3 = por %p194_p2, %p38_p13 }
  0x16   : > { %s2287_s20 = scalar_select %p29_p12, %s2152_s26, %s31_s19  }
  0x17   : > { %p1878_p5 = scmp.lt.s32.totalorder %s2156_s27, 2  ;;  %s249_s22 = sand.u32 1, %s2152_s26  }
  0x18   : > { %s1856_s23 = sshll.u32 %s2156_s27, 5  ;;  %p40_p7 = por %p39_p0, %p38_p13 }
  0x19   : > { %s1773_s29 = sshll.u32 %s249_s22, 5  ;;  %s258_s11 = scalar_lea.hbm %s2569_s0, %s1856_s23 }
  0x1a   : > { %s259_s13 = sshll.u32 %s258_s11, 4  ;;  %s253_s14 = scalar_lea.vmem [#allocation4], %s1773_s29  ;;  %s260_s13 = int_to_ptr.hbm [resolvable:$true] %s259_s13 }
  0x1b   : > { %s261_s18 = sshll.u32 %s253_s14, 4  ;;  %p2301_p9 = pnand %p1878_p5, %p40_p7  ;;  %s262_s18 = int_to_ptr.vmem [resolvable:$true] %s261_s18 }
  0x1c   : > { %s250_s16 = scalar_lea.sflag [#allocation5], %s249_s22  ;;  %s2056_s17 = sshra.s32 %s260_s13, 4  ;;  %s2057_s17 = int_to_ptr.hbm [resolvable:$true] %s2056_s17 }
  0x1d   : > { %s2058_s3 = scalar_lea.hbm %s2057_s17, 32  ;;  %p2060_p10 = pneg %p2301_p9 }
  0x1e   : > { %p2059_p2 = scmp.ne.s32.totalorder %s2057_s17, %s2058_s3  ;;  %s2063_s29 = scalar_lea.hbm %s2569_s0, 64 }
  0x1f   : > { %p2064_p0 = scmp.lt.s32.totalorder %s2057_s17, %s2569_s0  ;;  %p2065_p5 = scmp.lt.s32.totalorder %s2063_s29, %s2058_s3 }
  0x20   : > { %p2061_p12 = pnand %p2060_p10, %p2059_p2 }
  0x21   : > { %p2066_p7 = por %p2065_p5, %p2064_p0 }
  0x22   : > { %p2062_p13 = pneg %p2061_p12 }
  0x24   : > { %p2067_p11 = pnand %p2066_p7, %p2062_p13 }
  0x26   : > { %2070 = shalt.err (!%p2067_p11)
}
  0x27   : > { %s2586_s22 = smov 16   ;;  %s2587_s14 = smov 256  }
  0x28   : > { %1872 = dma.hbm_to_vmem [thread:$0]  (!%p2301_p9), %s260_s13, 512, %s262_s18, %s250_s16, %s2587_s14, %s2587_s14, %s2586_s22  }
  0x29   : > { %273 = sbr.rel (%p2265_p8) target bundleno = 989 (0x3dd), region = 48  ;;  %s2321_s23 = sand.u32 (!%p2265_p8), 1, %s2148_s25  }
  0x2a   : > { %s1777_s17 = sshll.u32 (!%p2265_p8), %s2321_s23, 5  ;;  %s276_s3 = scalar_lea.sflag (!%p2265_p8), [#allocation5], %s2321_s23 }
  0x2b   : > { %s279_s9 = scalar_lea.vmem (!%p2265_p8), [#allocation4], %s1777_s17 }
  0x2e   : > { %2131 = dma.done.wait (%p2252_p4), %s276_s3, 512  }
  0x2f   : > { %2133 = vsyncadd (%p2252_p4), %s276_s3, 4294966784 }
  0x30   : > { %2135 = dma.done.wait (%p45_p1), [#allocation8], 4608  }
  0x31   : > { %2137 = vsyncadd (%p45_p1), [#allocation8], 4294962688  ;;  %v318_v0 = vld [vmem:[%s279_s9 + $0x10] sm:$0xff]  ;;  %v319_v1 = vld [vmem:[%s279_s9 + $0x18] sm:$0xff]  ;;  %s2161_s12 = smov 126   ;;  %s2162_s16 = smov 127  }
  0x32   : > { %v1947_v2 = vpack.i.bf16 %v319_v1, %v318_v0  ;;  %403 = vmatpush.msra.mxu2 %v318_v0  ;;  %v316_v3 = vld [vmem:[%s279_s9] sm:$0xff]  ;;  %v317_v4 = vld [vmem:[%s279_s9 + $0x8] sm:$0xff]  ;;  %423 = vmatpush.msra.mxu3 %v319_v1  ;;  %s2163_s30 = smov 110   ;;  %s2164_s13 = smov 108   ;;  %v320_v6 = vld [vmem:[%s2570_s1] sm:$0xf] }
  0x33   : > { %v1957_v5 = vpack.i.bf16 %v317_v4, %v316_v3  ;;  %s2165_s18 = smov 109   ;;  %s2166_s19 = smov 92   ;;  %vm342_vm0 = vcmask 130048   ;;  %vm335_vm1 = vcmask 1039360   ;;  %vm501_vm2 = vcmask 900096  }
  0x34   : > { %1948 = vrot.lane.b32.xlu1 %v1947_v2, %s2161_s12  ;;  %1938 = vrot.lane.b32.xlu0 %v1947_v2, %s2162_s16  ;;  %s2167_s29 = smov 91   ;;  %s2168_s10 = smov 90   ;;  %v1780_v22 = vld [vmem:[%s2570_s1 + $0x4] sm:$0xf]  ;;  %vm439_vm3 = vcmask 1031168   ;;  %vm563_vm4 = vcmask 891904  }
  0x35   : > { %404 = vmatpush.msra.mxu2 %v316_v3  ;;  %424 = vmatpush.msra.mxu3 %v317_v4  ;;  %v1788_v30 = vld [vmem:[%s2570_s1 + $0xc] sm:$0xf]  ;;  %vm625_vm5 = vcmask 883712   ;;  %v1785_v42 = vld [vmem:[%s2570_s1 + $0x8] sm:$0xf]  ;;  %v2169_v43 = vmov 0  }
  0x36   : > { %1958 = vrot.lane.b32.xlu2 %v1957_v5, %s2161_s12  ;;  %1783 = vmatmul.msk.f32.vlgmr.msra.gmra.mxu2 %vm342_vm0, %v320_v6  ;;  %v863_v47 = vld [vmem:[%s2571_s2] sm:$0xf]  ;;  %vm687_vm6 = vcmask 752640   ;;  %vm749_vm7 = vcmask 744448   ;;  %v1791_v57 = vld [vmem:[%s2570_s1 + $0x10] sm:$0xf] }
  0x37   : > { %1784 = vmatmul.msk.f32.vlgmr.msra.gmra.mxu3 %vm342_vm0, %v320_v6  ;;  %2017 = vset.pattern.permute.xlu1 %v2169_v43  ;;  %v1794_v58 = vld [vmem:[%s2570_s1 + $0x14] sm:$0xf]  ;;  %vm811_vm8 = vcmask 736256   ;;  %vm995_vm9 = vcmask 1043456   ;;  %vm1012_vm10 = vcmask 31744   ;;  %vm1552_vm11 = vcmask 130052  }
  0x38   : > { %2018 = vset.pattern.permute.xlu0 %v2169_v43  ;;  %v879_v43 = vld [vmem:[#allocation7 + $0x30] sm:$0xff]  ;;  %vm1553_vm12 = vmor %vm1552_vm11, %vm995_vm9  ;;  %s2177_s3 = smov 74   ;;  %s2178_s9 = smov 56   ;;  %vm1666_vm13 = vcmask 15360   ;;  %vm1671_vm14 = vcmask 125952  }
  0x39   : > { %s2106_s22 = scalar_lea.hbm %s2576_s7, 8 }
  0x3c   : > { %1953 = vrot.lane.b32.xlu1 %v1947_v2, %s2163_s30  ;;  %1943 = vrot.lane.b32.xlu0 %v1957_v5, %s2162_s16 }
  0x3e   : > { %1963 = vrot.lane.b32.xlu2 %v1957_v5, %s2163_s30 }
  0x44   : > { %1973 = vrot.lane.b32.xlu1 %v1947_v2, %s2164_s13  ;;  %1968 = vrot.lane.b32.xlu0 %v1947_v2, %s2165_s18 }
  0x46   : > { %1978 = vrot.lane.b32.xlu2 %v1957_v5, %s2165_s18 }
  0x4c   : > { %1988 = vrot.lane.b32.xlu1 %v1947_v2, %s2166_s19  ;;  %1983 = vrot.lane.b32.xlu0 %v1957_v5, %s2164_s13 }
  0x4e   : > { %1993 = vrot.lane.b32.xlu2 %v1947_v2, %s2167_s29 }
  0x54   : > { %2003 = vrot.lane.b32.xlu1 %v1957_v5, %s2167_s29  ;;  %1998 = vrot.lane.b32.xlu0 %v1957_v5, %s2166_s19 }
  0x56   : > { %2008 = vrot.lane.b32.xlu2 %v1947_v2, %s2168_s10 }
  0x5c   : > { %2013 = vrot.lane.b32.xlu0 %v1957_v5, %s2168_s10  ;;  %866 = vperm.xlu1 %2017, %v863_v47  }
  0x90   : > { %v1959_v7 = vpop.permute.xlu2 %1958 }
  0x91   : > { %v1960_v26 = vunpack.i.l.bf16 %v1959_v7  ;;  %v1961_v29 = vunpack.i.h.bf16 %v1959_v7  ;;  %v1797_v7 = vld [vmem:[%s2570_s1 + $0x18] sm:$0xf] }
  0x93   : > { %v440_v33 = vsel %vm439_vm3, %v1960_v26, %v1961_v29  ;;  %v896_v26 = vld [vmem:[#allocation7 + $0xb8] sm:$0xff] }
  0x98   : > { %v1964_v12 = vpop.permute.xlu2 %1963 }
  0x99   : > { %v1965_v16 = vunpack.i.l.bf16 %v1964_v12  ;;  %v1966_v17 = vunpack.i.h.bf16 %v1964_v12 }
  0x9b   : > { %v502_v31 = vsel %vm501_vm2, %v1965_v16, %v1966_v17 }
  0xa0   : > { %v1979_v23 = vpop.permute.xlu2 %1978 }
  0xa1   : > { %v1981_v36 = vunpack.i.h.bf16 %v1979_v23  ;;  %v1980_v37 = vunpack.i.l.bf16 %v1979_v23  ;;  %v897_v23 = vld [vmem:[#allocation7 + $0xc0] sm:$0xff] }
  0xa3   : > { %v564_v48 = vsel %vm563_vm4, %v1980_v37, %v1981_v36  ;;  %v883_v37 = vld [vmem:[#allocation7 + $0x50] sm:$0xff] }
  0xa6   : > { %v1949_v8 = vpop.permute.xlu1 %1948  ;;  %v1939_v9 = vpop.permute.xlu0 %1938 }
  0xa7   : > { %v1940_v10 = vunpack.i.l.bf16 %v1939_v9  ;;  %v1941_v11 = vunpack.i.h.bf16 %v1939_v9  ;;  %v1950_v24 = vunpack.i.l.bf16 %v1949_v8  ;;  %v1951_v25 = vunpack.i.h.bf16 %v1949_v8  ;;  %v1800_v8 = vld [vmem:[%s2570_s1 + $0x1c] sm:$0xf] }
  0xa8   : > { %v1994_v46 = vpop.permute.xlu2 %1993 }
  0xa9   : > { %380 = vmatpush.msra.mxu1 %v1941_v11  ;;  %v337_v13 = vsel %vm335_vm1, %v1940_v10, %v1941_v11  ;;  %v441_v32 = vsel %vm439_vm3, %v1950_v24, %v1951_v25  ;;  %v1996_v51 = vunpack.i.h.bf16 %v1994_v46  ;;  %v1995_v52 = vunpack.i.l.bf16 %v1994_v46  ;;  %v898_v24 = vld [vmem:[#allocation7 + $0xc8] sm:$0xff] }
  0xaa   : > { %360 = vmatpush.msra.mxu0 %v337_v13  ;;  %v878_v46 = vld [vmem:[#allocation7 + $0x28] sm:$0xff] }
  0xab   : > { %v751_v61 = vsel %vm749_vm7, %v1995_v52, %v1996_v51  ;;  %v905_v52 = vld [vmem:[#allocation7 + $0x100] sm:$0xff] }
  0xae   : > { %v1954_v14 = vpop.permute.xlu1 %1953  ;;  %v1944_v15 = vpop.permute.xlu0 %1943 }
  0xaf   : > { %v1955_v18 = vunpack.i.l.bf16 %v1954_v14  ;;  %v1945_v19 = vunpack.i.l.bf16 %v1944_v15  ;;  %v1946_v20 = vunpack.i.h.bf16 %v1944_v15  ;;  %v1956_v21 = vunpack.i.h.bf16 %v1954_v14  ;;  %v1803_v15 = vld [vmem:[%s2570_s1 + $0x20] sm:$0xf] }
  0xb0   : > { %v2009_v62 = vpop.permute.xlu2 %2008 }
  0xb1   : > { %381 = vmatpush.msra.mxu1 %v1946_v20  ;;  %545 = vmatpush.msrb.mxu3 %v1956_v21  ;;  %v336_v27 = vsel %vm335_vm1, %v1945_v19, %v1946_v20  ;;  %v503_v28 = vsel %vm501_vm2, %v1955_v18, %v1956_v21  ;;  %v2011_v1 = vunpack.i.h.bf16 %v2009_v62  ;;  %v2010_v2 = vunpack.i.l.bf16 %v2009_v62  ;;  %v904_v18 = vld [vmem:[#allocation7 + $0xf8] sm:$0xff]  ;;  %v901_v19 = vld [vmem:[#allocation7 + $0xe0] sm:$0xff]  ;;  %v902_v20 = vld [vmem:[#allocation7 + $0xe8] sm:$0xff] }
  0xb2   : > { %361 = vmatpush.msra.mxu0 %v336_v27  ;;  %1782 = vmatmul.msk.f32.vlgmr.msra.gmra.mxu1 %vm342_vm0, %v1780_v22  ;;  %v899_v21 = vld [vmem:[#allocation7 + $0xd0] sm:$0xff]  ;;  %v893_v27 = vld [vmem:[#allocation7 + $0xa0] sm:$0xff] }
  0xb3   : > { %483 = vmatpush.msrb.mxu1 %v1951_v25  ;;  %525 = vmatpush.msrb.mxu2 %v503_v28  ;;  %v813_v11 = vsel %vm811_vm8, %v2010_v2, %v2011_v1  ;;  %v895_v25 = vld [vmem:[#allocation7 + $0xb0] sm:$0xff]  ;;  %v894_v28 = vld [vmem:[#allocation7 + $0xa8] sm:$0xff] }
  0xb4   : > { %1781 = vmatmul.msk.f32.vlgmr.msra.gmra.mxu0 %vm342_vm0, %v1780_v22  ;;  %546 = vmatpush.msrb.mxu3 %v1966_v17  ;;  %v903_v17 = vld [vmem:[#allocation7 + $0xf0] sm:$0xff]  ;;  %v900_v22 = vld [vmem:[#allocation7 + $0xd8] sm:$0xff] }
  0xb5   : > { %463 = vmatpush.msrb.mxu0 %v441_v32  ;;  %484 = vmatpush.msrb.mxu1 %v1961_v29  ;;  %v891_v29 = vld [vmem:[#allocation7 + $0x90] sm:$0xff]  ;;  %v890_v32 = vld [vmem:[#allocation7 + $0x88] sm:$0xff] }
  0xb6   : > { %v1974_v34 = vpop.permute.xlu1 %1973  ;;  %1790 = vmatmul.msk.f32.vlgmr.msrb.gmra.mxu3 %vm342_vm0, %v1788_v30  ;;  %v1969_v35 = vpop.permute.xlu0 %1968  ;;  %526 = vmatpush.msrb.mxu2 %v502_v31  ;;  %v889_v31 = vld [vmem:[#allocation7 + $0x80] sm:$0xff] }
  0xb7   : > { %464 = vmatpush.msrb.mxu0 %v440_v33  ;;  %v1976_v38 = vunpack.i.h.bf16 %v1974_v34  ;;  %v1975_v39 = vunpack.i.l.bf16 %v1974_v34  ;;  %v1971_v40 = vunpack.i.h.bf16 %v1969_v35  ;;  %v1970_v41 = vunpack.i.l.bf16 %v1969_v35  ;;  %1789 = vmatmul.msk.f32.vlgmr.msrb.gmra.mxu2 %vm342_vm0, %v1788_v30  ;;  %v892_v30 = vld [vmem:[#allocation7 + $0x98] sm:$0xff]  ;;  %v887_v33 = vld [vmem:[#allocation7 + $0x70] sm:$0xff]  ;;  %v885_v35 = vld [vmem:[#allocation7 + $0x60] sm:$0xff] }
  0xb8   : > { %v888_v34 = vld [vmem:[#allocation7 + $0x78] sm:$0xff] }
  0xb9   : > { %607 = vmatpush.msra.mxu1 %v1971_v40  ;;  %669 = vmatpush.msra.mxu3 %v1976_v38  ;;  %v565_v44 = vsel %vm563_vm4, %v1970_v41, %v1971_v40  ;;  %v627_v45 = vsel %vm625_vm5, %v1975_v39, %v1976_v38  ;;  %v884_v38 = vld [vmem:[#allocation7 + $0x58] sm:$0xff]  ;;  %v881_v40 = vld [vmem:[#allocation7 + $0x40] sm:$0xff]  ;;  %v882_v41 = vld [vmem:[#allocation7 + $0x48] sm:$0xff] }
  0xba   : > { %1787 = vmatmul.msk.f32.vlgmr.msrb.gmra.mxu1 %vm342_vm0, %v1785_v42  ;;  %587 = vmatpush.msra.mxu0 %v565_v44  ;;  %v880_v44 = vld [vmem:[#allocation7 + $0x38] sm:$0xff]  ;;  %v426_v47 = vpop.f32.mrf.mxu3 }
  0xbb   : > { %649 = vmatpush.msra.mxu2 %v627_v45  ;;  %608 = vmatpush.msra.mxu1 %v1981_v36  ;;  %v886_v36 = vld [vmem:[#allocation7 + $0x68] sm:$0xff]  ;;  %v877_v45 = vld [vmem:[#allocation7 + $0x20] sm:$0xff] }
  0xbc   : > { %1786 = vmatmul.msk.f32.vlgmr.msrb.gmra.mxu0 %vm342_vm0, %v1785_v42 }
  0xbd   : > { %588 = vmatpush.msra.mxu0 %v564_v48  ;;  %v907_v48 = vld [vmem:[#allocation7 + $0x110] sm:$0xff] }
  0xbe   : > { %v1989_v49 = vpop.permute.xlu1 %1988  ;;  %v1984_v50 = vpop.permute.xlu0 %1983 }
  0xbf   : > { %v1991_v53 = vunpack.i.h.bf16 %v1989_v49  ;;  %v1990_v54 = vunpack.i.l.bf16 %v1989_v49  ;;  %v1986_v55 = vunpack.i.h.bf16 %v1984_v50  ;;  %v1985_v56 = vunpack.i.l.bf16 %v1984_v50  ;;  %v908_v49 = vld [vmem:[#allocation7 + $0x118] sm:$0xff]  ;;  %v875_v50 = vld [vmem:[#allocation7 + $0x10] sm:$0xff] }
  0xc1   : > { %670 = vmatpush.msra.mxu3 %v1986_v55  ;;  %731 = vmatpush.msrb.mxu1 %v1991_v53  ;;  %v626_v59 = vsel %vm625_vm5, %v1985_v56, %v1986_v55  ;;  %v689_v60 = vsel %vm687_vm6, %v1990_v54, %v1991_v53  ;;  %v906_v53 = vld [vmem:[#allocation7 + $0x108] sm:$0xff]  ;;  %v873_v54 = vld [vmem:[#allocation7] sm:$0xff]  ;;  %v406_v55 = vpop.f32.mrf.mxu2 }
  0xc2   : > { %1793 = vmatmul.msk.f32.vlgmr.msra.gmra.mxu1 %vm342_vm0, %v1791_v57  ;;  %650 = vmatpush.msra.mxu2 %v626_v59 }
  0xc3   : > { %1796 = vmatmul.msk.f32.vlgmr.msra.gmra.mxu3 %vm342_vm0, %v1794_v58  ;;  %711 = vmatpush.msrb.mxu0 %v689_v60 }
  0xc4   : > { %1792 = vmatmul.msk.f32.vlgmr.msra.gmra.mxu0 %vm342_vm0, %v1791_v57  ;;  %1795 = vmatmul.msk.f32.vlgmr.msra.gmra.mxu2 %vm342_vm0, %v1794_v58  ;;  %v874_v57 = vld [vmem:[#allocation7 + $0x8] sm:$0xff] }
  0xc5   : > { %793 = vmatpush.msrb.mxu3 %v1996_v51  ;;  %773 = vmatpush.msrb.mxu2 %v751_v61  ;;  %v876_v51 = vld [vmem:[#allocation7 + $0x18] sm:$0xff] }
  0xc6   : > { %v2004_v63 = vpop.permute.xlu1 %2003  ;;  %v1999_v0 = vpop.permute.xlu0 %1998 }
  0xc7   : > { %v2006_v3 = vunpack.i.h.bf16 %v2004_v63  ;;  %v2005_v4 = vunpack.i.l.bf16 %v2004_v63  ;;  %v2001_v5 = vunpack.i.h.bf16 %v1999_v0  ;;  %v2000_v6 = vunpack.i.l.bf16 %v1999_v0 }
  0xc9   : > { %732 = vmatpush.msrb.mxu1 %v2001_v5  ;;  %794 = vmatpush.msrb.mxu3 %v2006_v3  ;;  %v688_v9 = vsel %vm687_vm6, %v2000_v6, %v2001_v5  ;;  %v750_v10 = vsel %vm749_vm7, %v2005_v4, %v2006_v3 }
  0xca   : > { %712 = vmatpush.msrb.mxu0 %v688_v9  ;;  %1799 = vmatmul.msk.f32.vlgmr.msrb.gmra.mxu1 %vm342_vm0, %v1797_v7 }
  0xcb   : > { %774 = vmatpush.msrb.mxu2 %v750_v10  ;;  %1802 = vmatmul.msk.f32.vlgmr.msrb.gmra.mxu3 %vm342_vm0, %v1800_v8 }
  0xcc   : > { %1798 = vmatmul.msk.f32.vlgmr.msrb.gmra.mxu0 %vm342_vm0, %v1797_v7  ;;  %1801 = vmatmul.msk.f32.vlgmr.msrb.gmra.mxu2 %vm342_vm0, %v1800_v8 }
  0xcd   : > { %855 = vmatpush.msra.mxu1 %v2011_v1  ;;  %835 = vmatpush.msra.mxu0 %v813_v11 }
  0xce   : > { %v2014_v12 = vpop.permute.xlu0 %2013  ;;  %912 = vmatpush.msra.mxu2 %v903_v17  ;;  %946 = vmatpush.msra.mxu3 %v907_v48 }
  0xcf   : > { %v2016_v13 = vunpack.i.h.bf16 %v2014_v12  ;;  %v2015_v14 = vunpack.i.l.bf16 %v2014_v12 }
  0xd0   : > { %913 = vmatpush.msra.mxu2 %v901_v19  ;;  %947 = vmatpush.msra.mxu3 %v905_v52 }
  0xd1   : > { %856 = vmatpush.msra.mxu1 %v2016_v13  ;;  %v812_v16 = vsel %vm811_vm8, %v2015_v14, %v2016_v13 }
  0xd2   : > { %836 = vmatpush.msra.mxu0 %v812_v16  ;;  %1805 = vmatmul.msk.f32.vlgmr.msra.gmra.mxu1 %vm342_vm0, %v1803_v15 }
  0xd3   : > { %914 = vmatpush.msra.mxu2 %v899_v21  ;;  %986 = vmatpush.msrb.mxu1 %v908_v49 }
  0xd4   : > { %1804 = vmatmul.msk.f32.vlgmr.msra.gmra.mxu0 %vm342_vm0, %v1803_v15 }
  0xd5   : > { %952 = vmatpush.msrb.mxu0 %v904_v18  ;;  %915 = vmatpush.msra.mxu2 %v897_v23 }
  0xd6   : > { %987 = vmatpush.msrb.mxu1 %v906_v53 }
  0xd7   : > { %953 = vmatpush.msrb.mxu0 %v902_v20  ;;  %916 = vmatpush.msra.mxu2 %v895_v25  ;;  %v867_v20 = vpop.permute.xlu1 %866 }
  0xd9   : > { %954 = vmatpush.msrb.mxu0 %v900_v22  ;;  %917 = vmatpush.msra.mxu2 %v893_v27 }
  0xdb   : > { %955 = vmatpush.msrb.mxu0 %v898_v24  ;;  %918 = vmatpush.msra.mxu2 %v891_v29 }
  0xdd   : > { %956 = vmatpush.msrb.mxu0 %v896_v26  ;;  %919 = vmatpush.msra.mxu2 %v889_v31 }
  0xdf   : > { %957 = vmatpush.msrb.mxu0 %v894_v28  ;;  %920 = vmatpush.msra.mxu2 %v887_v33 }
  0xe1   : > { %958 = vmatpush.msrb.mxu0 %v892_v30  ;;  %921 = vmatpush.msra.mxu2 %v885_v35 }
  0xe3   : > { %959 = vmatpush.msrb.mxu0 %v890_v32  ;;  %922 = vmatpush.msra.mxu2 %v883_v37 }
  0xe5   : > { %960 = vmatpush.msrb.mxu0 %v888_v34  ;;  %923 = vmatpush.msra.mxu2 %v881_v40 }
  0xe7   : > { %961 = vmatpush.msrb.mxu0 %v886_v36  ;;  %924 = vmatpush.msra.mxu2 %v879_v43 }
  0xe9   : > { %962 = vmatpush.msrb.mxu0 %v884_v38  ;;  %925 = vmatpush.msra.mxu2 %v877_v45 }
  0xeb   : > { %963 = vmatpush.msrb.mxu0 %v882_v41  ;;  %926 = vmatpush.msra.mxu2 %v875_v50 }
  0xed   : > { %964 = vmatpush.msrb.mxu0 %v880_v44  ;;  %927 = vmatpush.msra.mxu2 %v873_v54  ;;  %v2435_v54 = vld [vmem:[%s2575_s6] sm:$0xf] }
  0xef   : > { %965 = vmatpush.msrb.mxu0 %v878_v46 }
  0xf1   : > { %966 = vmatpush.msrb.mxu0 %v876_v51 }
  0xf3   : > { %967 = vmatpush.msrb.mxu0 %v874_v57 }
 0x12f   : > { %v383_v39 = vpop.f32.mrf.mxu1 }
 0x130   : > { %v427_v60 = vadd.f32 %v426_v47, %v383_v39 }
 0x131   : > { %v363_v42 = vpop.f32.mrf.mxu0 }
 0x132   : > { %v407_v63 = vadd.f32 %v406_v55, %v363_v42 }
 0x137   : > { %v486_v56 = vpop.f32.mrf.mxu1 }
 0x138   : > { %v490_v0 = vadd.f32 %v486_v56, %v427_v60  ;;  %v1808_v56 = vld [vmem:[%s2573_s4 + $0x4] sm:$0xf]  ;;  %v1000_v60 = vld [vmem:[%s2573_s4] sm:$0xf] }
 0x139   : > { %v466_v58 = vpop.f32.mrf.mxu0  ;;  %v548_v59 = vpop.f32.mrf.mxu3 }
 0x13a   : > { %v528_v61 = vpop.f32.mrf.mxu2  ;;  %v489_v2 = vadd.f32 %v466_v58, %v407_v63  ;;  %v552_v3 = vadd.f32 %v548_v59, %v490_v0  ;;  %v1817_v0 = vld [vmem:[%s2573_s4 + $0x8] sm:$0xf] }
 0x13c   : > { %v551_v4 = vadd.f32 %v528_v61, %v489_v2 }
 0x13f   : > { %v610_v62 = vpop.f32.mrf.mxu1 }
 0x140   : > { %v614_v6 = vadd.f32 %v610_v62, %v552_v3 }
 0x141   : > { %v590_v1 = vpop.f32.mrf.mxu0 }
 0x142   : > { %v613_v9 = vadd.f32 %v590_v1, %v551_v4  ;;  %v1827_v1 = vld [vmem:[%s2573_s4 + $0x10] sm:$0xf]  ;;  %v1822_v4 = vld [vmem:[%s2573_s4 + $0xc] sm:$0xf] }
 0x146   : > { %v672_v5 = vpop.f32.mrf.mxu3 }
 0x147   : > { %v652_v7 = vpop.f32.mrf.mxu2  ;;  %v734_v8 = vpop.f32.mrf.mxu1  ;;  %v676_v10 = vadd.f32 %v672_v5, %v614_v6 }
 0x148   : > { %v675_v12 = vadd.f32 %v652_v7, %v613_v9  ;;  %v1832_v9 = vld [vmem:[%s2573_s4 + $0x14] sm:$0xf] }
 0x149   : > { %v714_v11 = vpop.f32.mrf.mxu0  ;;  %v738_v13 = vadd.f32 %v734_v8, %v676_v10 }
 0x14a   : > { %v737_v14 = vadd.f32 %v714_v11, %v675_v12  ;;  %v1537_v11 = vld [vmem:[%s2574_s5] sm:$0xf] }
 0x14e   : > { %v796_v15 = vpop.f32.mrf.mxu3 }
 0x14f   : > { %v800_v16 = vadd.f32 %v796_v15, %v738_v13  ;;  %v776_v17 = vpop.f32.mrf.mxu2  ;;  %v858_v18 = vpop.f32.mrf.mxu1  ;;  %v1837_v13 = vld [vmem:[%s2573_s4 + $0x18] sm:$0xf] }
 0x150   : > { %v799_v19 = vadd.f32 %v776_v17, %v737_v14  ;;  %v1842_v17 = vld [vmem:[%s2573_s4 + $0x1c] sm:$0xf] }
 0x151   : > { %v862_v21 = vadd.f32 %v858_v18, %v800_v16  ;;  %v838_v22 = vpop.f32.mrf.mxu0 }
 0x152   : > { %v861_v23 = vadd.f32 %v838_v22, %v799_v19 }
 0x153   : > { %v870_v24 = vadd.f32 %v867_v20, %v862_v21  ;;  %v1847_v21 = vld [vmem:[%s2573_s4 + $0x20] sm:$0xf] }
 0x154   : > { %v869_v25 = vadd.f32 %v867_v20, %v861_v23 }
 0x155   : > { %v872_v26 = vmax.f32 %v870_v24, 0.0 }
 0x156   : > { %v871_v27 = vmax.f32 %v869_v25, 0.0 }
 0x157   : > { %1806 = vmatmul.msk.f32.vlgmr.msra.gmra.mxu3 %vm342_vm0, %v872_v26  ;;  %1807 = vmatmul.msk.f32.vlgmr.msrb.gmra.mxu1 %vm342_vm0, %v872_v26 }
 0x158   : > { %928 = vmatmul.f32.vlgmr.msra.gmra.mxu2 %v871_v27  ;;  %968 = vmatmul.f32.vlgmr.msrb.gmra.mxu0 %v871_v27 }
 0x1d4   : > { %v989_v28 = vpop.f32.mrf.mxu1 }
 0x1d5   : > { %v969_v29 = vpop.f32.mrf.mxu0 }
 0x1d6   : > { %v990_v30 = vadd.f32 %v989_v28, %v969_v29 }
 0x1d8   : > { %v994_v33 = vrot.slane %v990_v30, 4 }
 0x1da   : > { %v949_v31 = vpop.f32.mrf.mxu3 }
 0x1db   : > { %v929_v32 = vpop.f32.mrf.mxu2 }
 0x1dc   : > { %v950_v34 = vadd.f32 %v949_v31, %v929_v32  ;;  %v2170_v31 = vmov 1  }
 0x1dd   : > { %2019 = vset.pattern.permute.xlu2 %v2170_v31 }
 0x1de   : > { %v996_v35 = vsel %vm995_vm9, %v950_v34, %v994_v33 }
 0x1df   : > { %1004 = vst [vmem:[#allocation1] ss:$2 sm:$0xff] %v996_v35 }
 0x1e6   : > { %v1005_v36 = vld.sshfl [vmem:[#allocation1] sm:$0xff pattern:$0x75316420]  ;;  %v1006_v37 = vld.sshfl [vmem:[#allocation1 + $0x8] sm:$0xff pattern:$0x75316420] }
 0x1e7   : > { %1060 = vst [vmem:[#allocation1] ss:$2 sm:$0xff] %v996_v35  ;;  %1009 = vrot.lane.b32.xlu0 %v1006_v37, %s2162_s16  ;;  %1007 = vrot.lane.b32.xlu2 %v1005_v36, %s2162_s16  ;;  %s1779_s16 = sshll.u32 %s2321_s23, 2 }
 0x1e8   : > { %s315_s14 = scalar_lea.vmem [#allocation9], %s1779_s16 }
 0x1e9   : > { %s1686_s17 = sshll.u32 %s315_s14, 4  ;;  %s1687_s17 = int_to_ptr.vmem [resolvable:$true] %s1686_s17 }
 0x1ee   : > { %v1061_v38 = vld.sshfl [vmem:[#allocation1] sm:$0xff pattern:$0x75316420]  ;;  %v1062_v39 = vld.sshfl [vmem:[#allocation1 + $0x8] sm:$0xff pattern:$0x75316420] }
 0x1ef   : > { %1114 = vst [vmem:[#allocation1] ss:$2 sm:$0xff] %v996_v35 }
 0x1f6   : > { %v1115_v40 = vld.sshfl [vmem:[#allocation1] sm:$0xff pattern:$0x75316420]  ;;  %v1116_v41 = vld.sshfl [vmem:[#allocation1 + $0x8] sm:$0xff pattern:$0x75316420] }
 0x1f7   : > { %1175 = vst [vmem:[#allocation1] ss:$2 sm:$0xff] %v996_v35  ;;  %1119 = vrot.lane.b32.xlu2 %v1116_v41, %s2161_s12  ;;  %1117 = vrot.lane.b32.xlu1 %v1115_v40, %s2161_s12  ;;  %v1576_v40 = vld [vmem:[%s2575_s6] sm:$0xf]  ;;  %s2181_s12 = smov 2  }
 0x1fe   : > { %v1176_v42 = vld.sshfl [vmem:[#allocation1] sm:$0xff pattern:$0x75316420]  ;;  %v1177_v43 = vld.sshfl [vmem:[#allocation1 + $0x8] sm:$0xff pattern:$0x75316420] }
 0x1ff   : > { %1236 = vst [vmem:[#allocation1] ss:$2 sm:$0xff] %v996_v35  ;;  %1180 = vrot.lane.b32.xlu0 %v1177_v43, %s2163_s30  ;;  %1178 = vrot.lane.b32.xlu1 %v1176_v42, %s2163_s30  ;;  %v2172_v43 = vmov 3  }
 0x206   : > { %v1238_v44 = vld.sshfl [vmem:[#allocation1 + $0x8] sm:$0xff pattern:$0x75316420]  ;;  %v1237_v45 = vld.sshfl [vmem:[#allocation1] sm:$0xff pattern:$0x75316420] }
 0x207   : > { %1241 = vrot.lane.b32.xlu2 %v1238_v44, %s2165_s18  ;;  %1239 = vrot.lane.b32.xlu1 %v1237_v45, %s2165_s18  ;;  %1297 = vst [vmem:[#allocation1] ss:$2 sm:$0xff] %v996_v35  ;;  %v1591_v44 = vld [vmem:[%s2575_s6] sm:$0xf] }
 0x20e   : > { %v1299_v46 = vld.sshfl [vmem:[#allocation1 + $0x8] sm:$0xff pattern:$0x75316420]  ;;  %v1298_v47 = vld.sshfl [vmem:[#allocation1] sm:$0xff pattern:$0x75316420] }
 0x20f   : > { %1302 = vrot.lane.b32.xlu0 %v1299_v46, %s2164_s13  ;;  %1300 = vrot.lane.b32.xlu2 %v1298_v47, %s2164_s13  ;;  %1358 = vst [vmem:[#allocation1] ss:$2 sm:$0xff] %v996_v35  ;;  %v2173_v46 = vmov 4   ;;  %v1606_v47 = vld [vmem:[%s2575_s6] sm:$0xf]  ;;  %s1853_s13 = sshll.u32 %s2243_s28, 2 }
 0x210   : > { %s1674_s28 = scalar_lea.sflag [#allocation6], %s2321_s23 }
 0x216   : > { %v1360_v48 = vld.sshfl [vmem:[#allocation1 + $0x8] sm:$0xff pattern:$0x75316420]  ;;  %v1359_v49 = vld.sshfl [vmem:[#allocation1] sm:$0xff pattern:$0x75316420] }
 0x217   : > { %1363 = vrot.lane.b32.xlu0 %v1360_v48, %s2166_s19  ;;  %1361 = vrot.lane.b32.xlu2 %v1359_v49, %s2166_s19  ;;  %1419 = vst [vmem:[#allocation1] ss:$2 sm:$0xff] %v996_v35 }
 0x21e   : > { %v1421_v50 = vld.sshfl [vmem:[#allocation1 + $0x8] sm:$0xff pattern:$0x75316420]  ;;  %v1420_v51 = vld.sshfl [vmem:[#allocation1] sm:$0xff pattern:$0x75316420] }
 0x21f   : > { %1424 = vrot.lane.b32.xlu1 %v1421_v50, %s2167_s29  ;;  %1422 = vrot.lane.b32.xlu0 %v1420_v51, %s2167_s29  ;;  %1480 = vst [vmem:[#allocation1] ss:$2 sm:$0xff] %v996_v35 }
 0x226   : > { %v1482_v52 = vld.sshfl [vmem:[#allocation1 + $0x8] sm:$0xff pattern:$0x75316420]  ;;  %v1481_v53 = vld.sshfl [vmem:[#allocation1] sm:$0xff pattern:$0x75316420] }
 0x227   : > { %1485 = vrot.lane.b32.xlu1 %v1482_v52, %s2168_s10  ;;  %1483 = vrot.lane.b32.xlu2 %v1481_v53, %s2168_s10  ;;  %v1621_v53 = vld [vmem:[%s2575_s6] sm:$0xf]  ;;  %s1684_s10 = scalar_lea.hbm %s2576_s7, %s1853_s13 }
 0x228   : > { %1540 = vperm.xlu0 %2018, %v1537_v11  }
 0x22f   : > { %1559 = vperm.xlu1 %2017, %v2435_v54   ;;  %1565 = vperm.xlu2 %2019, %v2435_v54  }
 0x230   : > { %2022 = vset.pattern.permute.xlu0 %v2173_v46 }
 0x231   : > { %1610 = vperm.xlu0 %2022, %v1606_v47  }
 0x237   : > { %2021 = vset.pattern.permute.xlu1 %v2172_v43 }
 0x238   : > { %1595 = vperm.xlu1 %2021, %v1591_v44  }
 0x241   : > { %v1008_v55 = vpop.permute.xlu2 %1007 }
 0x251   : > { %v1120_v57 = vpop.permute.xlu2 %1119 }
 0x259   : > { %v1010_v58 = vpop.permute.xlu0 %1009 }
 0x25a   : > { %v1011_v59 = vsel %vm335_vm1, %v1008_v55, %v1010_v58  ;;  %1811 = vmatpush.msk.msra.mxu1 %vm995_vm9, %v1010_v58 }
 0x25b   : > { %1809 = vmatpush.msk.msrb.mxu3 %vm995_vm9, %v1011_v59  ;;  %1812 = vmatmul.msk.f32.vlgmr.msra.gmra.mxu1 %vm1012_vm10, %v1808_v56 }
 0x25c   : > { %1815 = vmatpush.msk.msrb.mxu1 %vm995_vm9, %v1062_v39  ;;  %1810 = vmatmul.msk.f32.vlgmr.msrb.gmra.mxu3 %vm1012_vm10, %v1808_v56  ;;  %v2171_v39 = vmov 2  }
 0x25d   : > { %1813 = vmatpush.msk.msra.mxu3 %vm995_vm9, %v1061_v38  ;;  %2020 = vset.pattern.permute.xlu2 %v2171_v39 }
 0x25e   : > { %1820 = vmatpush.msk.msra.mxu1 %vm995_vm9, %v1120_v57  ;;  %1580 = vperm.xlu2 %2020, %v1576_v40  }
 0x261   : > { %v1242_v61 = vpop.permute.xlu2 %1241 }
 0x263   : > { %1816 = vmatmul.msk.f32.vlgmr.msrb.gmra.mxu1 %vm1012_vm10, %v1000_v60 }
 0x264   : > { %1830 = vmatpush.msk.msrb.mxu1 %vm995_vm9, %v1242_v61  ;;  %1814 = vmatmul.msk.f32.vlgmr.msra.gmra.mxu3 %vm1012_vm10, %v1000_v60 }
 0x269   : > { %v1118_v62 = vpop.permute.xlu1 %1117  ;;  %v1301_v8 = vpop.permute.xlu2 %1300 }
 0x26a   : > { %v1121_v63 = vsel %vm439_vm3, %v1118_v62, %v1120_v57  ;;  %v2174_v57 = vmov 5  }
 0x26b   : > { %1818 = vmatpush.msk.msrb.mxu3 %vm995_vm9, %v1121_v63  ;;  %1821 = vmatmul.msk.f32.vlgmr.msra.gmra.mxu1 %vm1012_vm10, %v1817_v0 }
 0x26c   : > { %1819 = vmatmul.msk.f32.vlgmr.msrb.gmra.mxu3 %vm1012_vm10, %v1817_v0  ;;  %2023 = vset.pattern.permute.xlu2 %v2174_v57 }
 0x26d   : > { %1625 = vperm.xlu2 %2023, %v1621_v53  }
 0x271   : > { %v1181_v2 = vpop.permute.xlu0 %1180  ;;  %v1179_v3 = vpop.permute.xlu1 %1178 }
 0x272   : > { %v1182_v5 = vsel %vm501_vm2, %v1179_v3, %v1181_v2  ;;  %1825 = vmatpush.msk.msra.mxu3 %vm995_vm9, %v1181_v2  ;;  %v1362_v14 = vpop.permute.xlu2 %1361 }
 0x273   : > { %1823 = vmatpush.msk.msrb.mxu2 %vm995_vm9, %v1182_v5  ;;  %1831 = vmatmul.msk.f32.vlgmr.msrb.gmra.mxu1 %vm1012_vm10, %v1827_v1 }
 0x274   : > { %1824 = vmatmul.msk.f32.vlgmr.msrb.gmra.mxu2 %vm1012_vm10, %v1822_v4  ;;  %1826 = vmatmul.msk.f32.vlgmr.msra.gmra.mxu3 %vm1012_vm10, %v1822_v4  ;;  %v1636_v4 = vld [vmem:[%s2575_s6] sm:$0xf] }
 0x279   : > { %v1240_v6 = vpop.permute.xlu1 %1239 }
 0x27a   : > { %v1243_v7 = vsel %vm563_vm4, %v1240_v6, %v1242_v61 }
 0x27b   : > { %1828 = vmatpush.msk.msra.mxu0 %vm995_vm9, %v1243_v7  ;;  %v2175_v7 = vmov 6  }
 0x27c   : > { %1829 = vmatmul.msk.f32.vlgmr.msra.gmra.mxu0 %vm1012_vm10, %v1827_v1  ;;  %2024 = vset.pattern.permute.xlu2 %v2175_v7 }
 0x27d   : > { %1640 = vperm.xlu2 %2024, %v1636_v4  }
 0x281   : > { %v1303_v10 = vpop.permute.xlu0 %1302  ;;  %v1484_v22 = vpop.permute.xlu2 %1483 }
 0x282   : > { %v1304_v12 = vsel %vm625_vm5, %v1301_v8, %v1303_v10  ;;  %1835 = vmatpush.msk.msrb.mxu3 %vm995_vm9, %v1303_v10 }
 0x283   : > { %1833 = vmatpush.msk.msra.mxu2 %vm995_vm9, %v1304_v12  ;;  %1836 = vmatmul.msk.f32.vlgmr.msrb.gmra.mxu3 %vm1012_vm10, %v1832_v9 }
 0x284   : > { %1834 = vmatmul.msk.f32.vlgmr.msra.gmra.mxu2 %vm1012_vm10, %v1832_v9 }
 0x289   : > { %v1364_v15 = vpop.permute.xlu0 %1363 }
 0x28a   : > { %v1365_v16 = vsel %vm687_vm6, %v1362_v14, %v1364_v15  ;;  %1840 = vmatpush.msk.msra.mxu1 %vm995_vm9, %v1364_v15 }
 0x28b   : > { %1838 = vmatpush.msk.msrb.mxu0 %vm995_vm9, %v1365_v16  ;;  %1841 = vmatmul.msk.f32.vlgmr.msra.gmra.mxu1 %vm1012_vm10, %v1837_v13 }
 0x28c   : > { %1839 = vmatmul.msk.f32.vlgmr.msrb.gmra.mxu0 %vm1012_vm10, %v1837_v13 }
 0x291   : > { %v1425_v18 = vpop.permute.xlu1 %1424  ;;  %v1423_v19 = vpop.permute.xlu0 %1422 }
 0x292   : > { %v1426_v20 = vsel %vm749_vm7, %v1423_v19, %v1425_v18  ;;  %1845 = vmatpush.msk.msra.mxu3 %vm995_vm9, %v1425_v18  ;;  %v2176_v18 = vmov 7  }
 0x293   : > { %1843 = vmatpush.msk.msrb.mxu2 %vm995_vm9, %v1426_v20  ;;  %1846 = vmatmul.msk.f32.vlgmr.msra.gmra.mxu3 %vm1012_vm10, %v1842_v17 }
 0x294   : > { %1844 = vmatmul.msk.f32.vlgmr.msrb.gmra.mxu2 %vm1012_vm10, %v1842_v17  ;;  %2025 = vset.pattern.permute.xlu0 %v2176_v18 }
 0x299   : > { %v1486_v23 = vpop.permute.xlu1 %1485 }
 0x29a   : > { %v1487_v24 = vsel %vm811_vm8, %v1484_v22, %v1486_v23  ;;  %1850 = vmatpush.msk.msrb.mxu1 %vm995_vm9, %v1486_v23  ;;  %v1541_v1 = vpop.permute.xlu0 %1540 }
 0x29b   : > { %1848 = vmatpush.msk.msra.mxu0 %vm995_vm9, %v1487_v24  ;;  %1851 = vmatmul.msk.f32.vlgmr.msrb.gmra.mxu1 %vm1012_vm10, %v1847_v21 }
 0x29c   : > { %1849 = vmatmul.msk.f32.vlgmr.msra.gmra.mxu0 %vm1012_vm10, %v1847_v21 }
 0x2a1   : > { %v1560_v31 = vpop.permute.xlu1 %1559 }
 0x2d8   : > { %v1057_v26 = vpop.f32.mrf.mxu1 }
 0x2df   : > { %v1037_v25 = vpop.f32.mrf.mxu3 }
 0x2e0   : > { %v1107_v28 = vpop.f32.mrf.mxu1 }
 0x2e1   : > { %v1108_v32 = vadd.f32 %v1107_v28, %v1057_v26 }
 0x2e7   : > { %v1087_v27 = vpop.f32.mrf.mxu3 }
 0x2e8   : > { %v1166_v30 = vpop.f32.mrf.mxu1  ;;  %v1088_v33 = vadd.f32 %v1087_v27, %v1037_v25  ;;  %v1651_v27 = vld [vmem:[%s2575_s6] sm:$0xf] }
 0x2e9   : > { %v1170_v37 = vadd.f32 %v1166_v30, %v1108_v32  ;;  %v1566_v30 = vpop.permute.xlu2 %1565 }
 0x2ef   : > { %v1146_v29 = vpop.f32.mrf.mxu3 }
 0x2f0   : > { %v1288_v36 = vpop.f32.mrf.mxu1  ;;  %v1169_v41 = vadd.f32 %v1146_v29, %v1088_v33  ;;  %v1596_v33 = vpop.permute.xlu1 %1595 }
 0x2f1   : > { %v1581_v32 = vpop.permute.xlu2 %1580 }
 0x2f7   : > { %v1227_v34 = vpop.f32.mrf.mxu3  ;;  %v1207_v35 = vpop.f32.mrf.mxu2 }
 0x2f8   : > { %v1231_v42 = vadd.f32 %v1227_v34, %v1170_v37  ;;  %v1230_v45 = vadd.f32 %v1207_v35, %v1169_v41  ;;  %v1611_v35 = vpop.permute.xlu0 %1610 }
 0x2f9   : > { %v1268_v38 = vpop.f32.mrf.mxu0  ;;  %v1626_v34 = vpop.permute.xlu2 %1625 }
 0x2fa   : > { %v1292_v49 = vadd.f32 %v1288_v36, %v1231_v42  ;;  %v1291_v51 = vadd.f32 %v1268_v38, %v1230_v45 }
 0x301   : > { %v1641_v37 = vpop.permute.xlu2 %1640 }
 0x306   : > { %v1349_v48 = vpop.f32.mrf.mxu3 }
 0x307   : > { %v1329_v50 = vpop.f32.mrf.mxu2  ;;  %v1353_v54 = vadd.f32 %v1349_v48, %v1292_v49 }
 0x308   : > { %v1410_v52 = vpop.f32.mrf.mxu1  ;;  %v1352_v56 = vadd.f32 %v1329_v50, %v1291_v51 }
 0x309   : > { %v1390_v55 = vpop.f32.mrf.mxu0  ;;  %v1414_v58 = vadd.f32 %v1410_v52, %v1353_v54 }
 0x30a   : > { %v1413_v59 = vadd.f32 %v1390_v55, %v1352_v56 }
 0x316   : > { %v1471_v60 = vpop.f32.mrf.mxu3 }
 0x317   : > { %v1475_v61 = vadd.f32 %v1471_v60, %v1414_v58  ;;  %v1451_v62 = vpop.f32.mrf.mxu2 }
 0x318   : > { %v1474_v63 = vadd.f32 %v1451_v62, %v1413_v59  ;;  %v1532_v0 = vpop.f32.mrf.mxu1 }
 0x319   : > { %v1536_v2 = vadd.f32 %v1532_v0, %v1475_v61  ;;  %v1512_v3 = vpop.f32.mrf.mxu0 }
 0x31a   : > { %v1535_v5 = vadd.f32 %v1512_v3, %v1474_v63 }
 0x31b   : > { %v1544_v6 = vadd.f32 %v1541_v1, %v1536_v2 }
 0x31c   : > { %v1543_v8 = vadd.f32 %v1541_v1, %v1535_v5 }
 0x31d   : > { %v1546_v9 = vmax.f32 %v1544_v6, 0.0 }
 0x31e   : > { %v1545_v10 = vmax.f32 %v1543_v8, 0.0 }
 0x31f   : > { %v1549_v11 = vrot.slane %v1546_v9, 4 }
 0x321   : > { %v1550_v12 = vsel %vm995_vm9, %v1545_v10, %v1549_v11 }
 0x322   : > { %1554 = vst.msk [vmem:[#allocation3] sm:$0xff] %vm1553_vm12, %v1550_v12 }
 0x329   : > { %v1556_v13 = vld [vmem:[#allocation3] sm:$0xf] }
 0x32a   : > { %1569 = vst [vmem:[#allocation1] ss:$2 sm:$0xff] %v1556_v13  ;;  %v1577_v14 = vld [vmem:[#allocation3] sm:$0xf]  ;;  %v1562_v41 = vmul.f32 %v1560_v31, %v1556_v13 }
 0x32b   : > { %v1592_v16 = vld [vmem:[#allocation3] sm:$0xf] }
 0x32c   : > { %v1607_v19 = vld [vmem:[#allocation3] sm:$0xf] }
 0x32d   : > { %v1622_v21 = vld [vmem:[#allocation3] sm:$0xf] }
 0x32e   : > { %v1637_v23 = vld [vmem:[#allocation3] sm:$0xf] }
 0x32f   : > { %v1652_v25 = vld [vmem:[#allocation3] sm:$0xff] }
 0x331   : > { %v1570_v15 = vld.sshfl [vmem:[#allocation1] sm:$0xff pattern:$0x75316420] }
 0x332   : > { %1571 = vrot.lane.b32.xlu1 %v1570_v15, %s2163_s30  ;;  %1584 = vst [vmem:[#allocation1] ss:$2 sm:$0xff] %v1577_v14  ;;  %s2179_s30 = smov 38  }
 0x339   : > { %v1585_v17 = vld.sshfl [vmem:[#allocation1] sm:$0xff pattern:$0x75316420] }
 0x33a   : > { %1586 = vrot.lane.b32.xlu0 %v1585_v17, %s2166_s19  ;;  %1599 = vst [vmem:[#allocation1] ss:$2 sm:$0xff] %v1592_v16  ;;  %s2180_s19 = smov 20  }
 0x341   : > { %v1600_v20 = vld.sshfl [vmem:[#allocation1] sm:$0xff pattern:$0x75316420] }
 0x342   : > { %1601 = vrot.lane.b32.xlu2 %v1600_v20, %s2177_s3  ;;  %1614 = vst [vmem:[#allocation1] ss:$2 sm:$0xff] %v1607_v19  ;;  %s1688_s3 = sshll.u32 %s1684_s10, 4  ;;  %s1689_s3 = int_to_ptr.hbm [resolvable:$true] %s1688_s3 }
 0x349   : > { %v1615_v22 = vld.sshfl [vmem:[#allocation1] sm:$0xff pattern:$0x75316420] }
 0x34a   : > { %1616 = vrot.lane.b32.xlu1 %v1615_v22, %s2178_s9  ;;  %1629 = vst [vmem:[#allocation1] ss:$2 sm:$0xff] %v1622_v21  ;;  %s2100_s9 = sshra.s32 %s1689_s3, 4  ;;  %s2101_s9 = int_to_ptr.hbm [resolvable:$true] %s2100_s9 }
 0x34b   : > { %p2107_p11 = scmp.lt.s32.totalorder %s2101_s9, %s2576_s7 }
 0x351   : > { %v1630_v24 = vld.sshfl [vmem:[#allocation1] sm:$0xff pattern:$0x75316420] }
 0x352   : > { %1631 = vrot.lane.b32.xlu1 %v1630_v24, %s2179_s30  ;;  %1644 = vst [vmem:[#allocation1] ss:$2 sm:$0xff] %v1637_v23  ;;  %s2102_s30 = scalar_lea.hbm %s2101_s9, 4 }
 0x353   : > { %p2103_p1 = scmp.ne.s32.totalorder %s2101_s9, %s2102_s30  ;;  %p2108_p9 = scmp.lt.s32.totalorder %s2106_s22, %s2102_s30 }
 0x355   : > { %p2104_p4 = pnand %p2103_p1, %p2291_p3  ;;  %p2109_p2 = por %p2108_p9, %p2107_p11 }
 0x357   : > { %p2105_p8 = pneg %p2104_p4 }
 0x359   : > { %v1645_v26 = vld.sshfl [vmem:[#allocation1] sm:$0xff pattern:$0x75316420]  ;;  %p2110_p10 = pnand %p2109_p2, %p2105_p8 }
 0x35a   : > { %1646 = vrot.lane.b32.xlu0 %v1645_v26, %s2180_s19  ;;  %1659 = vst [vmem:[#allocation1] ss:$2 sm:$0xff] %v1652_v25 }
 0x361   : > { %v1661_v28 = vld.sshfl [vmem:[#allocation1 + $0x8] sm:$0xff pattern:$0x75316420]  ;;  %v1660_v29 = vld.sshfl [vmem:[#allocation1] sm:$0xff pattern:$0x75316420] }
 0x362   : > { %1664 = vrot.lane.b32.xlu2 %v1661_v28, %s2181_s12  ;;  %1662 = vrot.lane.b32.xlu1 %v1660_v29, %s2181_s12 }
 0x363   : > { %1655 = vperm.xlu0 %2025, %v1651_v27  }
 0x39c   : > { %v1602_v44 = vpop.permute.xlu2 %1601 }
 0x39d   : > { %v1604_v48 = vmul.f32 %v1602_v44, %v1596_v33 }
 0x3a4   : > { %v1572_v36 = vpop.permute.xlu1 %1571 }
 0x3a5   : > { %v1574_v40 = vmul.f32 %v1572_v36, %v1566_v30 }
 0x3a7   : > { %v1575_v43 = vadd.f32 %v1574_v40, %v1562_v41 }
 0x3ac   : > { %v1587_v39 = vpop.permute.xlu0 %1586 }
 0x3ad   : > { %v1589_v42 = vmul.f32 %v1587_v39, %v1581_v32 }
 0x3af   : > { %v1590_v45 = vadd.f32 %v1589_v42, %v1575_v43 }
 0x3b1   : > { %v1605_v50 = vadd.f32 %v1604_v48, %v1590_v45 }
 0x3bc   : > { %v1617_v38 = vpop.permute.xlu1 %1616  ;;  %v1665_v54 = vpop.permute.xlu2 %1664 }
 0x3bd   : > { %v1619_v49 = vmul.f32 %v1617_v38, %v1611_v35 }
 0x3bf   : > { %v1620_v52 = vadd.f32 %v1619_v49, %v1605_v50 }
 0x3c4   : > { %v1632_v46 = vpop.permute.xlu1 %1631 }
 0x3c5   : > { %v1634_v51 = vmul.f32 %v1632_v46, %v1626_v34 }
 0x3c7   : > { %v1635_v55 = vadd.f32 %v1634_v51, %v1620_v52 }
 0x3cc   : > { %v1647_v47 = vpop.permute.xlu0 %1646 }
 0x3cd   : > { %v1649_v53 = vmul.f32 %v1647_v47, %v1641_v37 }
 0x3cf   : > { %v1650_v59 = vadd.f32 %v1649_v53, %v1635_v55 }
 0x3d4   : > { %v1663_v56 = vpop.permute.xlu1 %1662 }
 0x3d5   : > { %v1656_v57 = vpop.permute.xlu0 %1655  ;;  %v1667_v58 = vsel %vm1666_vm13, %v1663_v56, %v1665_v54 }
 0x3d6   : > { %v1669_v60 = vmul.f32 %v1667_v58, %v1656_v57 }
 0x3d8   : > { %v1670_v61 = vadd.f32 %v1669_v60, %v1650_v59 }
 0x3da   : > { %1672 = vst.msk [vmem:[%s315_s14] sm:$0xf] %vm1671_vm14, %v1670_v61 }
 0x3db   : > { %2113 = shalt.err (!%p2110_p10)
}
 0x3dc   : > { %1863 = dma.vmem_to_hbm [thread:$0]  (%p2291_p3), %s1687_s17, 64, %s1689_s3, %s1674_s28  }
 0x3dd PF: > { %s1700_s23 = sand.u32 1, %s2144_s24   ;;  %p2588_p12 = scmp.ge.s32.totalorder %s2156_s27, 2 }
 0x3de   : > { %s1701_s13 = scalar_lea.sflag [#allocation6], %s1700_s23 }
 0x3df   : > { %p1874_p13 = pnand %p2588_p12, %p2257_p6 }
 0x3e1   : > { %p1875_p0 = pneg %p1874_p13 }
 0x3e3   : > { %2139 = dma.done.wait (%p1875_p0), %s1701_s13, 64  }
 0x3e4   : > { %2141 = vsyncadd (%p1875_p0), %s1701_s13, 4294967232  ;;  %p21_p5 = scmp.ge.s32.totalorder %s2275_s15, 4   ;;  %s2589_s24 = smov %s2148_s25 }
 0x3e5   : > { %s2590_s25 = smov %s2152_s26  ;;  %s2591_s26 = smov %s2287_s20 }
 0x3e6   : > { %s2592_s27 = smov %s2275_s15  ;;  %23 = sbr.rel (!%p21_p5) target bundleno = 8 (0x8), region = 113 }
 0x3eb   :  { %1707 = vsyncpa [#allocation5], 1 }
 0x3ec   :  { %1709 = vsyncpa [#allocation5 + $0x1], 1 }
 0x3ed   :  { %1710 = vsyncpa [#allocation8], 1 }
 0x3ee   :  { %1711 = vsyncpa [#allocation6], 1 }
 0x3ef   :  { %1713 = vsyncpa [#allocation6 + $0x1], 1 }

</bundles_post_ra>
